<compile_context>
chip_gen: v7x
topology: tpu7x:2x2x1
jax: 0.10.0
libtpu: 0.0.40
codegen_flags: <defaults>
</compile_context>

<pallas_src>
import functools

import jax
import jax.numpy as jnp
from jax.experimental import pallas as pl
from jax.experimental.pallas import tpu as pltpu


def _round_up(n, m):
    return ((n + m - 1) // m) * m


def _lstm_chunk_kernel(preact_ref, whh_ref, out_ref, h_sc, c_sc, *, hidden, chunk):
    """Process `chunk` consecutive time steps of a single-layer LSTM.

    preact_ref : (TT, TB, 4H)  precomputed x@W_ih^T + (b_ih+b_hh) for this chunk
    whh_ref    : (H, 4H)       recurrent weights (bf16, resident, constant index)
    out_ref    : (TT, TB, H)   hidden-state outputs for this chunk
    h_sc, c_sc : (TB, H) f32   recurrent state, persists across grid iterations
    Gate layout along the 4H axis (PyTorch order): [i | f | g | o], each H wide.
    H here is the lane-padded hidden size (multiple of 128).
    """
    # New batch tile starts at time-chunk 0 -> zero-init the recurrent state.
    @pl.when(pl.program_id(1) == 0)
    def _():
        h_sc[...] = jnp.zeros_like(h_sc)
        c_sc[...] = jnp.zeros_like(c_sc)

    def step(t, carry):
        h, c = carry
        # Only the small recurrent matmul is on the serial path (bf16 x bf16,
        # f32 accumulation); the input projection was hoisted to one big matmul.
        gates = preact_ref[t] + jnp.dot(
            h.astype(whh_ref.dtype), whh_ref[...],
            preferred_element_type=jnp.float32)
        i = jax.nn.sigmoid(gates[:, 0 * hidden:1 * hidden])
        f = jax.nn.sigmoid(gates[:, 1 * hidden:2 * hidden])
        g = jnp.tanh(gates[:, 2 * hidden:3 * hidden])
        o = jax.nn.sigmoid(gates[:, 3 * hidden:4 * hidden])
        c_new = f * c + i * g
        h_new = o * jnp.tanh(c_new)
        out_ref[t] = h_new
        return h_new, c_new

    h, c = jax.lax.fori_loop(0, chunk, step, (h_sc[...], c_sc[...]), unroll=True)
    h_sc[...] = h
    c_sc[...] = c


def lstm_layer_time_major(x_tbd, w_ih, w_hh, b_ih, b_hh, *, time_chunk=16):
    """One nn.LSTM(num_layers=1) forward, zero initial state, time-major I/O.

    x_tbd : (T, B, Din_actual) f32; Din_actual may exceed w_ih's input dim
            because previous layers keep their lane padding (padded features
            are exactly zero, matched by zero weight rows -> exact).
    Returns (T, B, Hp) f32 where Hp = round_up(H, 128); columns >= H are zero.
    """
    T, B, d_act = x_tbd.shape
    H4, d_in = w_ih.shape
    assert d_act >= d_in
    H = H4 // 4
    Hp = _round_up(H, 128)

    # ---- weight prep: gate-aligned lane padding ---------------------------
    # W_ih^T: (d_in, 4H) -> (d_act, 4Hp) with each gate block padded to Hp.
    wih_t = w_ih.T.reshape(d_in, 4, H)
    wih_t = jnp.pad(wih_t, ((0, d_act - d_in), (0, 0), (0, Hp - H)))
    wih_t = wih_t.reshape(d_act, 4 * Hp)
    # Combined bias, padded per gate.
    bias = (b_ih + b_hh).reshape(4, H)
    bias = jnp.pad(bias, ((0, 0), (0, Hp - H))).reshape(4 * Hp)
    # W_hh^T: (H, 4H) -> (Hp, 4Hp), bf16 resident weight for the MXU.
    whh_t = w_hh.T.reshape(H, 4, H)
    whh_t = jnp.pad(whh_t, ((0, Hp - H), (0, 0), (0, Hp - H)))
    whh_t = whh_t.reshape(Hp, 4 * Hp).astype(jnp.bfloat16)

    # ---- hoisted input projection: one large batched matmul (off the
    # sequential critical path; XLA maps it straight onto the MXU) ----------
    preact = (x_tbd @ wih_t) + bias            # (T, B, 4Hp) f32

    # ---- time chunking -----------------------------------------------------
    TT = min(time_chunk, T)
    Tp = _round_up(T, TT)
    if Tp != T:
        preact = jnp.pad(preact, ((0, Tp - T), (0, 0), (0, 0)))
    num_chunks = Tp // TT

    # ---- batch tiling: two shards for v7x's 2 TensorCores when B is large --
    if B >= 16 and B % 16 == 0:
        TB = B // 2
    else:
        TB = B
    num_btiles = B // TB

    kernel = functools.partial(_lstm_chunk_kernel, hidden=Hp, chunk=TT)

    # Explicit VMEM budget (2x-buffered tiles + resident weights + state),
    # with a 32 MiB floor so v5e's 16 MiB default scoped limit never binds.
    needed = (2 * TT * TB * 4 * Hp * 4      # preact tiles (f32)
              + 2 * TT * TB * Hp * 4        # out tiles (f32)
              + 2 * Hp * 4 * Hp * 2         # W_hh^T (bf16)
              + 2 * TB * Hp * 4)            # h, c scratch
    vmem_limit = int(min(max(4 * needed, 32 * 1024 * 1024), 64 * 1024 * 1024))

    out_p = pl.pallas_call(
        kernel,
        out_shape=jax.ShapeDtypeStruct((Tp, B, Hp), jnp.float32),
        grid_spec=pltpu.PrefetchScalarGridSpec(
            num_scalar_prefetch=0,
            grid=(num_btiles, num_chunks),
            in_specs=[
                pl.BlockSpec((TT, TB, 4 * Hp), lambda b, t: (t, b, 0)),   # preact
                pl.BlockSpec((Hp, 4 * Hp), lambda b, t: (0, 0)),          # W_hh^T
            ],
            out_specs=pl.BlockSpec((TT, TB, Hp), lambda b, t: (t, b, 0)),
            scratch_shapes=[
                pltpu.VMEM((TB, Hp), jnp.float32),   # h state
                pltpu.VMEM((TB, Hp), jnp.float32),   # c state
            ],
        ),
        compiler_params=pltpu.CompilerParams(
            dimension_semantics=("parallel", "arbitrary"),  # batch || , time serial
            vmem_limit_bytes=vmem_limit,
        ),
    )(preact, whh_t)

    return out_p[:T]   # (T, B, Hp); lane padding kept (zeros) for the next layer


def init_custom_lstm_params(key, input_size, hidden_sizes):
    """Deterministic parameter init (PyTorch-style uniform(-1/sqrt(H), 1/sqrt(H)))."""
    params = []
    for i, H in enumerate(hidden_sizes):
        D = input_size if i == 0 else hidden_sizes[i - 1]
        bound = 1.0 / jnp.sqrt(jnp.float32(H))
        key, k1, k2, k3, k4 = jax.random.split(key, 5)
        params.append({
            "w_ih": jax.random.uniform(k1, (4 * H, D), jnp.float32, -bound, bound),
            "w_hh": jax.random.uniform(k2, (4 * H, H), jnp.float32, -bound, bound),
            "b_ih": jax.random.uniform(k3, (4 * H,), jnp.float32, -bound, bound),
            "b_hh": jax.random.uniform(k4, (4 * H,), jnp.float32, -bound, bound),
        })
    return params


def custom_lstm_forward(params, x, time_chunk=16):
    """CustomLSTM forward: stack of LSTM layers, then (output, zeros(B, 1)).

    x: (B, T, D) f32 (batch_first). Single transpose in / out for the whole stack.
    """
    B = x.shape[0]
    out = jnp.transpose(x, (1, 0, 2))                     # time-major once
    for p in params:
        out = lstm_layer_time_major(out, p["w_ih"], p["w_hh"], p["b_ih"], p["b_hh"],
                                    time_chunk=time_chunk)
    h_last = params[-1]["w_hh"].shape[1]
    out = out[:, :, :h_last]                              # drop lane padding
    out = jnp.transpose(out, (1, 0, 2))                   # back to batch-first once
    # PyTorch returns torch.zeros(x.shape[0], 1).to('cuda'); device move is a no-op here.
    return out, jnp.zeros((B, 1), jnp.float32)


def custom_lstm_reference(params, x):
    """Pure-JAX f32 reference (matches PyTorch nn.LSTM math, zero init state)."""
    out = x
    for p in params:
        w_ih, w_hh = p["w_ih"], p["w_hh"]
        b = p["b_ih"] + p["b_hh"]
        H = w_hh.shape[1]
        Bsz = out.shape[0]
        x_tbd = jnp.transpose(out, (1, 0, 2))

        def step(carry, x_t, w_ih=w_ih, w_hh=w_hh, b=b):
            h, c = carry
            gates = x_t @ w_ih.T + h @ w_hh.T + b
            i, f, g, o = jnp.split(gates, 4, axis=-1)
            c = jax.nn.sigmoid(f) * c + jax.nn.sigmoid(i) * jnp.tanh(g)
            h = jax.nn.sigmoid(o) * jnp.tanh(c)
            return (h, c), h

        init = (jnp.zeros((Bsz, H), jnp.float32), jnp.zeros((Bsz, H), jnp.float32))
        _, ys = jax.lax.scan(step, init, x_tbd)
        out = jnp.transpose(ys, (1, 0, 2))
    return out


if __name__ == "__main__":
    # Small shapes consistent with the module: batch=2, seq=8, input_size=16,
    # two stacked LSTM layers with hidden sizes [32, 32].
    B, T, D = 2, 8, 16
    hidden_sizes = [32, 32]

    key = jax.random.PRNGKey(0)
    key, kx = jax.random.split(key)
    x = jax.random.normal(kx, (B, T, D), jnp.float32)
    params = init_custom_lstm_params(key, D, hidden_sizes)

    fwd = jax.jit(custom_lstm_forward)
    out, aux = fwd(params, x)
    out = jax.block_until_ready(out)
    aux = jax.block_until_ready(aux)

    assert out.shape == (B, T, hidden_sizes[-1]), out.shape
    assert aux.shape == (B, 1), aux.shape

    # Correctness vs pure-JAX f32 reference (bf16 recurrent matmul -> small tol).
    ref = custom_lstm_reference(params, x)
    max_err = float(jnp.max(jnp.abs(out - ref)))
    assert max_err < 5e-2, f"max abs err too large: {max_err}"

    print("KERNEL_OK")
</pallas_src>

<mosaic_0001>
module attributes {stable_mosaic.version = 11 : i64} {
  func.func @_lstm_chunk_kernel(%arg0: i32, %arg1: i32, %arg2: memref<8x2x512xf32, #tpu.memory_space<vmem>>, %arg3: memref<128x512xbf16, #tpu.memory_space<vmem>>, %arg4: memref<8x2x128xf32, #tpu.memory_space<vmem>>, %arg5: memref<2x128xf32, #tpu.memory_space<vmem>>, %arg6: memref<2x128xf32, #tpu.memory_space<vmem>>) attributes {dimension_semantics = [#tpu.dimension_semantics<parallel>, #tpu.dimension_semantics<arbitrary>], iteration_bounds = array<i64: 1, 1>, scalar_prefetch = 0 : i64, scratch_operands = 2 : i64, tpu.core_type = #tpu.core_type<tc>, window_params = [{transform_indices = @transform_0, window_bounds = array<i64: 8, 2, 512>}, {pipeline_mode = #tpu.pipeline_mode<synchronous>, transform_indices = @transform_1, window_bounds = array<i64: 128, 512>}, {transform_indices = @transform_2, window_bounds = array<i64: 8, 2, 128>}]} {
    %c0_i32 = arith.constant 0 : i32
    %0 = arith.cmpi eq, %arg1, %c0_i32 : i32
    %1 = arith.extui %0 : i1 to i32
    %c0_i32_0 = arith.constant 0 : i32
    %2 = arith.cmpi ne, %1, %c0_i32_0 : i32
    scf.if %2 {
      %cst_88 = arith.constant 0.000000e+00 : f32
      %295 = vector.broadcast %cst_88 : f32 to vector<2x128xf32>
      %c0_89 = arith.constant 0 : index
      %c0_90 = arith.constant 0 : index
      %296 = vector.load %arg5[%c0_89, %c0_90] : memref<2x128xf32, #tpu.memory_space<vmem>>, vector<2x128xf32>
      tpu.vector_store %arg5[%c0_89, %c0_90], %295 {strides = array<i32>} : memref<2x128xf32, #tpu.memory_space<vmem>>, vector<2x128xf32>,
      %cst_91 = arith.constant 0.000000e+00 : f32
      %297 = vector.broadcast %cst_91 : f32 to vector<2x128xf32>
      %c0_92 = arith.constant 0 : index
      %c0_93 = arith.constant 0 : index
      %298 = vector.load %arg6[%c0_92, %c0_93] : memref<2x128xf32, #tpu.memory_space<vmem>>, vector<2x128xf32>
      tpu.vector_store %arg6[%c0_92, %c0_93], %297 {strides = array<i32>} : memref<2x128xf32, #tpu.memory_space<vmem>>, vector<2x128xf32>,
    } else {
    }
    %c0 = arith.constant 0 : index
    %c0_1 = arith.constant 0 : index
    %3 = vector.load %arg5[%c0, %c0_1] : memref<2x128xf32, #tpu.memory_space<vmem>>, vector<2x128xf32>
    %c0_2 = arith.constant 0 : index
    %c0_3 = arith.constant 0 : index
    %4 = vector.load %arg6[%c0_2, %c0_3] : memref<2x128xf32, #tpu.memory_space<vmem>>, vector<2x128xf32>
    %c0_i32_4 = arith.constant 0 : i32
    %5 = arith.index_cast %c0_i32_4 : i32 to index
    %c0_5 = arith.constant 0 : index
    %c0_6 = arith.constant 0 : index
    %6 = vector.load %arg2[%5, %c0_5, %c0_6] : memref<8x2x512xf32, #tpu.memory_space<vmem>>, vector<1x2x512xf32>
    %7 = vector.shape_cast %6 : vector<1x2x512xf32> to vector<2x512xf32>
    %8 = arith.truncf %3 : vector<2x128xf32> to vector<2x128xbf16>
    %c0_7 = arith.constant 0 : index
    %c0_8 = arith.constant 0 : index
    %9 = vector.load %arg3[%c0_7, %c0_8] : memref<128x512xbf16, #tpu.memory_space<vmem>>, vector<128x512xbf16>
    %cst = arith.constant dense<0.000000e+00> : vector<2x512xf32>
    %10 = tpu.matmul %8, %9, %cst {dimension_numbers = #tpu.dot_dimension_numbers<[1], [0], [0], [1], [0, 0, 1, 1], [], []>} : vector<2x128xbf16>, vector<128x512xbf16>, vector<2x512xf32> -> vector<2x512xf32>
    %11 = arith.addf %7, %10 : vector<2x512xf32>
    %12 = vector.extract_strided_slice %11 {offsets = [0, 0], sizes = [2, 128], strides = [1, 1]} : vector<2x512xf32> to vector<2x128xf32>
    %13 = arith.negf %12 : vector<2x128xf32>
    %14 = math.exp %13 : vector<2x128xf32>
    %cst_9 = arith.constant 1.000000e+00 : f32
    %15 = vector.broadcast %cst_9 : f32 to vector<2x128xf32>
    %16 = arith.addf %15, %14 : vector<2x128xf32>
    %17 = arith.divf %15, %16 : vector<2x128xf32>
    %18 = vector.extract_strided_slice %11 {offsets = [0, 128], sizes = [2, 128], strides = [1, 1]} : vector<2x512xf32> to vector<2x128xf32>
    %19 = arith.negf %18 : vector<2x128xf32>
    %20 = math.exp %19 : vector<2x128xf32>
    %cst_10 = arith.constant 1.000000e+00 : f32
    %21 = vector.broadcast %cst_10 : f32 to vector<2x128xf32>
    %22 = arith.addf %21, %20 : vector<2x128xf32>
    %23 = arith.divf %21, %22 : vector<2x128xf32>
    %24 = vector.extract_strided_slice %11 {offsets = [0, 256], sizes = [2, 128], strides = [1, 1]} : vector<2x512xf32> to vector<2x128xf32>
    %25 = math.tanh %24 : vector<2x128xf32>
    %26 = vector.extract_strided_slice %11 {offsets = [0, 384], sizes = [2, 128], strides = [1, 1]} : vector<2x512xf32> to vector<2x128xf32>
    %27 = arith.negf %26 : vector<2x128xf32>
    %28 = math.exp %27 : vector<2x128xf32>
    %cst_11 = arith.constant 1.000000e+00 : f32
    %29 = vector.broadcast %cst_11 : f32 to vector<2x128xf32>
    %30 = arith.addf %29, %28 : vector<2x128xf32>
    %31 = arith.divf %29, %30 : vector<2x128xf32>
    %32 = arith.mulf %23, %4 : vector<2x128xf32>
    %33 = arith.mulf %17, %25 : vector<2x128xf32>
    %34 = arith.addf %32, %33 : vector<2x128xf32>
    %35 = math.tanh %34 : vector<2x128xf32>
    %36 = arith.mulf %31, %35 : vector<2x128xf32>
    %37 = arith.index_cast %c0_i32_4 : i32 to index
    %c0_12 = arith.constant 0 : index
    %c0_13 = arith.constant 0 : index
    %38 = vector.load %arg4[%37, %c0_12, %c0_13] : memref<8x2x128xf32, #tpu.memory_space<vmem>>, vector<1x2x128xf32>
    %39 = vector.shape_cast %38 : vector<1x2x128xf32> to vector<2x128xf32>
    %40 = vector.shape_cast %36 : vector<2x128xf32> to vector<1x2x128xf32>
    tpu.vector_store %arg4[%37, %c0_12, %c0_13], %40 {strides = array<i32>} : memref<8x2x128xf32, #tpu.memory_space<vmem>>, vector<1x2x128xf32>,
    %c1_i32 = arith.constant 1 : i32
    %41 = arith.index_cast %c1_i32 : i32 to index
    %c0_14 = arith.constant 0 : index
    %c0_15 = arith.constant 0 : index
    %42 = vector.load %arg2[%41, %c0_14, %c0_15] : memref<8x2x512xf32, #tpu.memory_space<vmem>>, vector<1x2x512xf32>
    %43 = vector.shape_cast %42 : vector<1x2x512xf32> to vector<2x512xf32>
    %44 = arith.truncf %36 : vector<2x128xf32> to vector<2x128xbf16>
    %c0_16 = arith.constant 0 : index
    %c0_17 = arith.constant 0 : index
    %45 = vector.load %arg3[%c0_16, %c0_17] : memref<128x512xbf16, #tpu.memory_space<vmem>>, vector<128x512xbf16>
    %cst_18 = arith.constant dense<0.000000e+00> : vector<2x512xf32>
    %46 = tpu.matmul %44, %45, %cst_18 {dimension_numbers = #tpu.dot_dimension_numbers<[1], [0], [0], [1], [0, 0, 1, 1], [], []>} : vector<2x128xbf16>, vector<128x512xbf16>, vector<2x512xf32> -> vector<2x512xf32>
    %47 = arith.addf %43, %46 : vector<2x512xf32>
    %48 = vector.extract_strided_slice %47 {offsets = [0, 0], sizes = [2, 128], strides = [1, 1]} : vector<2x512xf32> to vector<2x128xf32>
    %49 = arith.negf %48 : vector<2x128xf32>
    %50 = math.exp %49 : vector<2x128xf32>
    %cst_19 = arith.constant 1.000000e+00 : f32
    %51 = vector.broadcast %cst_19 : f32 to vector<2x128xf32>
    %52 = arith.addf %51, %50 : vector<2x128xf32>
    %53 = arith.divf %51, %52 : vector<2x128xf32>
    %54 = vector.extract_strided_slice %47 {offsets = [0, 128], sizes = [2, 128], strides = [1, 1]} : vector<2x512xf32> to vector<2x128xf32>
    %55 = arith.negf %54 : vector<2x128xf32>
    %56 = math.exp %55 : vector<2x128xf32>
    %cst_20 = arith.constant 1.000000e+00 : f32
    %57 = vector.broadcast %cst_20 : f32 to vector<2x128xf32>
    %58 = arith.addf %57, %56 : vector<2x128xf32>
    %59 = arith.divf %57, %58 : vector<2x128xf32>
    %60 = vector.extract_strided_slice %47 {offsets = [0, 256], sizes = [2, 128], strides = [1, 1]} : vector<2x512xf32> to vector<2x128xf32>
    %61 = math.tanh %60 : vector<2x128xf32>
    %62 = vector.extract_strided_slice %47 {offsets = [0, 384], sizes = [2, 128], strides = [1, 1]} : vector<2x512xf32> to vector<2x128xf32>
    %63 = arith.negf %62 : vector<2x128xf32>
    %64 = math.exp %63 : vector<2x128xf32>
    %cst_21 = arith.constant 1.000000e+00 : f32
    %65 = vector.broadcast %cst_21 : f32 to vector<2x128xf32>
    %66 = arith.addf %65, %64 : vector<2x128xf32>
    %67 = arith.divf %65, %66 : vector<2x128xf32>
    %68 = arith.mulf %59, %34 : vector<2x128xf32>
    %69 = arith.mulf %53, %61 : vector<2x128xf32>
    %70 = arith.addf %68, %69 : vector<2x128xf32>
    %71 = math.tanh %70 : vector<2x128xf32>
    %72 = arith.mulf %67, %71 : vector<2x128xf32>
    %73 = arith.index_cast %c1_i32 : i32 to index
    %c0_22 = arith.constant 0 : index
    %c0_23 = arith.constant 0 : index
    %74 = vector.load %arg4[%73, %c0_22, %c0_23] : memref<8x2x128xf32, #tpu.memory_space<vmem>>, vector<1x2x128xf32>
    %75 = vector.shape_cast %74 : vector<1x2x128xf32> to vector<2x128xf32>
    %76 = vector.shape_cast %72 : vector<2x128xf32> to vector<1x2x128xf32>
    tpu.vector_store %arg4[%73, %c0_22, %c0_23], %76 {strides = array<i32>} : memref<8x2x128xf32, #tpu.memory_space<vmem>>, vector<1x2x128xf32>,
    %c2_i32 = arith.constant 2 : i32
    %77 = arith.index_cast %c2_i32 : i32 to index
    %c0_24 = arith.constant 0 : index
    %c0_25 = arith.constant 0 : index
    %78 = vector.load %arg2[%77, %c0_24, %c0_25] : memref<8x2x512xf32, #tpu.memory_space<vmem>>, vector<1x2x512xf32>
    %79 = vector.shape_cast %78 : vector<1x2x512xf32> to vector<2x512xf32>
    %80 = arith.truncf %72 : vector<2x128xf32> to vector<2x128xbf16>
    %c0_26 = arith.constant 0 : index
    %c0_27 = arith.constant 0 : index
    %81 = vector.load %arg3[%c0_26, %c0_27] : memref<128x512xbf16, #tpu.memory_space<vmem>>, vector<128x512xbf16>
    %cst_28 = arith.constant dense<0.000000e+00> : vector<2x512xf32>
    %82 = tpu.matmul %80, %81, %cst_28 {dimension_numbers = #tpu.dot_dimension_numbers<[1], [0], [0], [1], [0, 0, 1, 1], [], []>} : vector<2x128xbf16>, vector<128x512xbf16>, vector<2x512xf32> -> vector<2x512xf32>
    %83 = arith.addf %79, %82 : vector<2x512xf32>
    %84 = vector.extract_strided_slice %83 {offsets = [0, 0], sizes = [2, 128], strides = [1, 1]} : vector<2x512xf32> to vector<2x128xf32>
    %85 = arith.negf %84 : vector<2x128xf32>
    %86 = math.exp %85 : vector<2x128xf32>
    %cst_29 = arith.constant 1.000000e+00 : f32
    %87 = vector.broadcast %cst_29 : f32 to vector<2x128xf32>
    %88 = arith.addf %87, %86 : vector<2x128xf32>
    %89 = arith.divf %87, %88 : vector<2x128xf32>
    %90 = vector.extract_strided_slice %83 {offsets = [0, 128], sizes = [2, 128], strides = [1, 1]} : vector<2x512xf32> to vector<2x128xf32>
    %91 = arith.negf %90 : vector<2x128xf32>
    %92 = math.exp %91 : vector<2x128xf32>
    %cst_30 = arith.constant 1.000000e+00 : f32
    %93 = vector.broadcast %cst_30 : f32 to vector<2x128xf32>
    %94 = arith.addf %93, %92 : vector<2x128xf32>
    %95 = arith.divf %93, %94 : vector<2x128xf32>
    %96 = vector.extract_strided_slice %83 {offsets = [0, 256], sizes = [2, 128], strides = [1, 1]} : vector<2x512xf32> to vector<2x128xf32>
    %97 = math.tanh %96 : vector<2x128xf32>
    %98 = vector.extract_strided_slice %83 {offsets = [0, 384], sizes = [2, 128], strides = [1, 1]} : vector<2x512xf32> to vector<2x128xf32>
    %99 = arith.negf %98 : vector<2x128xf32>
    %100 = math.exp %99 : vector<2x128xf32>
    %cst_31 = arith.constant 1.000000e+00 : f32
    %101 = vector.broadcast %cst_31 : f32 to vector<2x128xf32>
    %102 = arith.addf %101, %100 : vector<2x128xf32>
    %103 = arith.divf %101, %102 : vector<2x128xf32>
    %104 = arith.mulf %95, %70 : vector<2x128xf32>
    %105 = arith.mulf %89, %97 : vector<2x128xf32>
    %106 = arith.addf %104, %105 : vector<2x128xf32>
    %107 = math.tanh %106 : vector<2x128xf32>
    %108 = arith.mulf %103, %107 : vector<2x128xf32>
    %109 = arith.index_cast %c2_i32 : i32 to index
    %c0_32 = arith.constant 0 : index
    %c0_33 = arith.constant 0 : index
    %110 = vector.load %arg4[%109, %c0_32, %c0_33] : memref<8x2x128xf32, #tpu.memory_space<vmem>>, vector<1x2x128xf32>
    %111 = vector.shape_cast %110 : vector<1x2x128xf32> to vector<2x128xf32>
    %112 = vector.shape_cast %108 : vector<2x128xf32> to vector<1x2x128xf32>
    tpu.vector_store %arg4[%109, %c0_32, %c0_33], %112 {strides = array<i32>} : memref<8x2x128xf32, #tpu.memory_space<vmem>>, vector<1x2x128xf32>,
    %c3_i32 = arith.constant 3 : i32
    %113 = arith.index_cast %c3_i32 : i32 to index
    %c0_34 = arith.constant 0 : index
    %c0_35 = arith.constant 0 : index
    %114 = vector.load %arg2[%113, %c0_34, %c0_35] : memref<8x2x512xf32, #tpu.memory_space<vmem>>, vector<1x2x512xf32>
    %115 = vector.shape_cast %114 : vector<1x2x512xf32> to vector<2x512xf32>
    %116 = arith.truncf %108 : vector<2x128xf32> to vector<2x128xbf16>
    %c0_36 = arith.constant 0 : index
    %c0_37 = arith.constant 0 : index
    %117 = vector.load %arg3[%c0_36, %c0_37] : memref<128x512xbf16, #tpu.memory_space<vmem>>, vector<128x512xbf16>
    %cst_38 = arith.constant dense<0.000000e+00> : vector<2x512xf32>
    %118 = tpu.matmul %116, %117, %cst_38 {dimension_numbers = #tpu.dot_dimension_numbers<[1], [0], [0], [1], [0, 0, 1, 1], [], []>} : vector<2x128xbf16>, vector<128x512xbf16>, vector<2x512xf32> -> vector<2x512xf32>
    %119 = arith.addf %115, %118 : vector<2x512xf32>
    %120 = vector.extract_strided_slice %119 {offsets = [0, 0], sizes = [2, 128], strides = [1, 1]} : vector<2x512xf32> to vector<2x128xf32>
    %121 = arith.negf %120 : vector<2x128xf32>
    %122 = math.exp %121 : vector<2x128xf32>
    %cst_39 = arith.constant 1.000000e+00 : f32
    %123 = vector.broadcast %cst_39 : f32 to vector<2x128xf32>
    %124 = arith.addf %123, %122 : vector<2x128xf32>
    %125 = arith.divf %123, %124 : vector<2x128xf32>
    %126 = vector.extract_strided_slice %119 {offsets = [0, 128], sizes = [2, 128], strides = [1, 1]} : vector<2x512xf32> to vector<2x128xf32>
    %127 = arith.negf %126 : vector<2x128xf32>
    %128 = math.exp %127 : vector<2x128xf32>
    %cst_40 = arith.constant 1.000000e+00 : f32
    %129 = vector.broadcast %cst_40 : f32 to vector<2x128xf32>
    %130 = arith.addf %129, %128 : vector<2x128xf32>
    %131 = arith.divf %129, %130 : vector<2x128xf32>
    %132 = vector.extract_strided_slice %119 {offsets = [0, 256], sizes = [2, 128], strides = [1, 1]} : vector<2x512xf32> to vector<2x128xf32>
    %133 = math.tanh %132 : vector<2x128xf32>
    %134 = vector.extract_strided_slice %119 {offsets = [0, 384], sizes = [2, 128], strides = [1, 1]} : vector<2x512xf32> to vector<2x128xf32>
    %135 = arith.negf %134 : vector<2x128xf32>
    %136 = math.exp %135 : vector<2x128xf32>
    %cst_41 = arith.constant 1.000000e+00 : f32
    %137 = vector.broadcast %cst_41 : f32 to vector<2x128xf32>
    %138 = arith.addf %137, %136 : vector<2x128xf32>
    %139 = arith.divf %137, %138 : vector<2x128xf32>
    %140 = arith.mulf %131, %106 : vector<2x128xf32>
    %141 = arith.mulf %125, %133 : vector<2x128xf32>
    %142 = arith.addf %140, %141 : vector<2x128xf32>
    %143 = math.tanh %142 : vector<2x128xf32>
    %144 = arith.mulf %139, %143 : vector<2x128xf32>
    %145 = arith.index_cast %c3_i32 : i32 to index
    %c0_42 = arith.constant 0 : index
    %c0_43 = arith.constant 0 : index
    %146 = vector.load %arg4[%145, %c0_42, %c0_43] : memref<8x2x128xf32, #tpu.memory_space<vmem>>, vector<1x2x128xf32>
    %147 = vector.shape_cast %146 : vector<1x2x128xf32> to vector<2x128xf32>
    %148 = vector.shape_cast %144 : vector<2x128xf32> to vector<1x2x128xf32>
    tpu.vector_store %arg4[%145, %c0_42, %c0_43], %148 {strides = array<i32>} : memref<8x2x128xf32, #tpu.memory_space<vmem>>, vector<1x2x128xf32>,
    %c4_i32 = arith.constant 4 : i32
    %149 = arith.index_cast %c4_i32 : i32 to index
    %c0_44 = arith.constant 0 : index
    %c0_45 = arith.constant 0 : index
    %150 = vector.load %arg2[%149, %c0_44, %c0_45] : memref<8x2x512xf32, #tpu.memory_space<vmem>>, vector<1x2x512xf32>
    %151 = vector.shape_cast %150 : vector<1x2x512xf32> to vector<2x512xf32>
    %152 = arith.truncf %144 : vector<2x128xf32> to vector<2x128xbf16>
    %c0_46 = arith.constant 0 : index
    %c0_47 = arith.constant 0 : index
    %153 = vector.load %arg3[%c0_46, %c0_47] : memref<128x512xbf16, #tpu.memory_space<vmem>>, vector<128x512xbf16>
    %cst_48 = arith.constant dense<0.000000e+00> : vector<2x512xf32>
    %154 = tpu.matmul %152, %153, %cst_48 {dimension_numbers = #tpu.dot_dimension_numbers<[1], [0], [0], [1], [0, 0, 1, 1], [], []>} : vector<2x128xbf16>, vector<128x512xbf16>, vector<2x512xf32> -> vector<2x512xf32>
    %155 = arith.addf %151, %154 : vector<2x512xf32>
    %156 = vector.extract_strided_slice %155 {offsets = [0, 0], sizes = [2, 128], strides = [1, 1]} : vector<2x512xf32> to vector<2x128xf32>
    %157 = arith.negf %156 : vector<2x128xf32>
    %158 = math.exp %157 : vector<2x128xf32>
    %cst_49 = arith.constant 1.000000e+00 : f32
    %159 = vector.broadcast %cst_49 : f32 to vector<2x128xf32>
    %160 = arith.addf %159, %158 : vector<2x128xf32>
    %161 = arith.divf %159, %160 : vector<2x128xf32>
    %162 = vector.extract_strided_slice %155 {offsets = [0, 128], sizes = [2, 128], strides = [1, 1]} : vector<2x512xf32> to vector<2x128xf32>
    %163 = arith.negf %162 : vector<2x128xf32>
    %164 = math.exp %163 : vector<2x128xf32>
    %cst_50 = arith.constant 1.000000e+00 : f32
    %165 = vector.broadcast %cst_50 : f32 to vector<2x128xf32>
    %166 = arith.addf %165, %164 : vector<2x128xf32>
    %167 = arith.divf %165, %166 : vector<2x128xf32>
    %168 = vector.extract_strided_slice %155 {offsets = [0, 256], sizes = [2, 128], strides = [1, 1]} : vector<2x512xf32> to vector<2x128xf32>
    %169 = math.tanh %168 : vector<2x128xf32>
    %170 = vector.extract_strided_slice %155 {offsets = [0, 384], sizes = [2, 128], strides = [1, 1]} : vector<2x512xf32> to vector<2x128xf32>
    %171 = arith.negf %170 : vector<2x128xf32>
    %172 = math.exp %171 : vector<2x128xf32>
    %cst_51 = arith.constant 1.000000e+00 : f32
    %173 = vector.broadcast %cst_51 : f32 to vector<2x128xf32>
    %174 = arith.addf %173, %172 : vector<2x128xf32>
    %175 = arith.divf %173, %174 : vector<2x128xf32>
    %176 = arith.mulf %167, %142 : vector<2x128xf32>
    %177 = arith.mulf %161, %169 : vector<2x128xf32>
    %178 = arith.addf %176, %177 : vector<2x128xf32>
    %179 = math.tanh %178 : vector<2x128xf32>
    %180 = arith.mulf %175, %179 : vector<2x128xf32>
    %181 = arith.index_cast %c4_i32 : i32 to index
    %c0_52 = arith.constant 0 : index
    %c0_53 = arith.constant 0 : index
    %182 = vector.load %arg4[%181, %c0_52, %c0_53] : memref<8x2x128xf32, #tpu.memory_space<vmem>>, vector<1x2x128xf32>
    %183 = vector.shape_cast %182 : vector<1x2x128xf32> to vector<2x128xf32>
    %184 = vector.shape_cast %180 : vector<2x128xf32> to vector<1x2x128xf32>
    tpu.vector_store %arg4[%181, %c0_52, %c0_53], %184 {strides = array<i32>} : memref<8x2x128xf32, #tpu.memory_space<vmem>>, vector<1x2x128xf32>,
    %c5_i32 = arith.constant 5 : i32
    %185 = arith.index_cast %c5_i32 : i32 to index
    %c0_54 = arith.constant 0 : index
    %c0_55 = arith.constant 0 : index
    %186 = vector.load %arg2[%185, %c0_54, %c0_55] : memref<8x2x512xf32, #tpu.memory_space<vmem>>, vector<1x2x512xf32>
    %187 = vector.shape_cast %186 : vector<1x2x512xf32> to vector<2x512xf32>
    %188 = arith.truncf %180 : vector<2x128xf32> to vector<2x128xbf16>
    %c0_56 = arith.constant 0 : index
    %c0_57 = arith.constant 0 : index
    %189 = vector.load %arg3[%c0_56, %c0_57] : memref<128x512xbf16, #tpu.memory_space<vmem>>, vector<128x512xbf16>
    %cst_58 = arith.constant dense<0.000000e+00> : vector<2x512xf32>
    %190 = tpu.matmul %188, %189, %cst_58 {dimension_numbers = #tpu.dot_dimension_numbers<[1], [0], [0], [1], [0, 0, 1, 1], [], []>} : vector<2x128xbf16>, vector<128x512xbf16>, vector<2x512xf32> -> vector<2x512xf32>
    %191 = arith.addf %187, %190 : vector<2x512xf32>
    %192 = vector.extract_strided_slice %191 {offsets = [0, 0], sizes = [2, 128], strides = [1, 1]} : vector<2x512xf32> to vector<2x128xf32>
    %193 = arith.negf %192 : vector<2x128xf32>
    %194 = math.exp %193 : vector<2x128xf32>
    %cst_59 = arith.constant 1.000000e+00 : f32
    %195 = vector.broadcast %cst_59 : f32 to vector<2x128xf32>
    %196 = arith.addf %195, %194 : vector<2x128xf32>
    %197 = arith.divf %195, %196 : vector<2x128xf32>
    %198 = vector.extract_strided_slice %191 {offsets = [0, 128], sizes = [2, 128], strides = [1, 1]} : vector<2x512xf32> to vector<2x128xf32>
    %199 = arith.negf %198 : vector<2x128xf32>
    %200 = math.exp %199 : vector<2x128xf32>
    %cst_60 = arith.constant 1.000000e+00 : f32
    %201 = vector.broadcast %cst_60 : f32 to vector<2x128xf32>
    %202 = arith.addf %201, %200 : vector<2x128xf32>
    %203 = arith.divf %201, %202 : vector<2x128xf32>
    %204 = vector.extract_strided_slice %191 {offsets = [0, 256], sizes = [2, 128], strides = [1, 1]} : vector<2x512xf32> to vector<2x128xf32>
    %205 = math.tanh %204 : vector<2x128xf32>
    %206 = vector.extract_strided_slice %191 {offsets = [0, 384], sizes = [2, 128], strides = [1, 1]} : vector<2x512xf32> to vector<2x128xf32>
    %207 = arith.negf %206 : vector<2x128xf32>
    %208 = math.exp %207 : vector<2x128xf32>
    %cst_61 = arith.constant 1.000000e+00 : f32
    %209 = vector.broadcast %cst_61 : f32 to vector<2x128xf32>
    %210 = arith.addf %209, %208 : vector<2x128xf32>
    %211 = arith.divf %209, %210 : vector<2x128xf32>
    %212 = arith.mulf %203, %178 : vector<2x128xf32>
    %213 = arith.mulf %197, %205 : vector<2x128xf32>
    %214 = arith.addf %212, %213 : vector<2x128xf32>
    %215 = math.tanh %214 : vector<2x128xf32>
    %216 = arith.mulf %211, %215 : vector<2x128xf32>
    %217 = arith.index_cast %c5_i32 : i32 to index
    %c0_62 = arith.constant 0 : index
    %c0_63 = arith.constant 0 : index
    %218 = vector.load %arg4[%217, %c0_62, %c0_63] : memref<8x2x128xf32, #tpu.memory_space<vmem>>, vector<1x2x128xf32>
    %219 = vector.shape_cast %218 : vector<1x2x128xf32> to vector<2x128xf32>
    %220 = vector.shape_cast %216 : vector<2x128xf32> to vector<1x2x128xf32>
    tpu.vector_store %arg4[%217, %c0_62, %c0_63], %220 {strides = array<i32>} : memref<8x2x128xf32, #tpu.memory_space<vmem>>, vector<1x2x128xf32>,
    %c6_i32 = arith.constant 6 : i32
    %221 = arith.index_cast %c6_i32 : i32 to index
    %c0_64 = arith.constant 0 : index
    %c0_65 = arith.constant 0 : index
    %222 = vector.load %arg2[%221, %c0_64, %c0_65] : memref<8x2x512xf32, #tpu.memory_space<vmem>>, vector<1x2x512xf32>
    %223 = vector.shape_cast %222 : vector<1x2x512xf32> to vector<2x512xf32>
    %224 = arith.truncf %216 : vector<2x128xf32> to vector<2x128xbf16>
    %c0_66 = arith.constant 0 : index
    %c0_67 = arith.constant 0 : index
    %225 = vector.load %arg3[%c0_66, %c0_67] : memref<128x512xbf16, #tpu.memory_space<vmem>>, vector<128x512xbf16>
    %cst_68 = arith.constant dense<0.000000e+00> : vector<2x512xf32>
    %226 = tpu.matmul %224, %225, %cst_68 {dimension_numbers = #tpu.dot_dimension_numbers<[1], [0], [0], [1], [0, 0, 1, 1], [], []>} : vector<2x128xbf16>, vector<128x512xbf16>, vector<2x512xf32> -> vector<2x512xf32>
    %227 = arith.addf %223, %226 : vector<2x512xf32>
    %228 = vector.extract_strided_slice %227 {offsets = [0, 0], sizes = [2, 128], strides = [1, 1]} : vector<2x512xf32> to vector<2x128xf32>
    %229 = arith.negf %228 : vector<2x128xf32>
    %230 = math.exp %229 : vector<2x128xf32>
    %cst_69 = arith.constant 1.000000e+00 : f32
    %231 = vector.broadcast %cst_69 : f32 to vector<2x128xf32>
    %232 = arith.addf %231, %230 : vector<2x128xf32>
    %233 = arith.divf %231, %232 : vector<2x128xf32>
    %234 = vector.extract_strided_slice %227 {offsets = [0, 128], sizes = [2, 128], strides = [1, 1]} : vector<2x512xf32> to vector<2x128xf32>
    %235 = arith.negf %234 : vector<2x128xf32>
    %236 = math.exp %235 : vector<2x128xf32>
    %cst_70 = arith.constant 1.000000e+00 : f32
    %237 = vector.broadcast %cst_70 : f32 to vector<2x128xf32>
    %238 = arith.addf %237, %236 : vector<2x128xf32>
    %239 = arith.divf %237, %238 : vector<2x128xf32>
    %240 = vector.extract_strided_slice %227 {offsets = [0, 256], sizes = [2, 128], strides = [1, 1]} : vector<2x512xf32> to vector<2x128xf32>
    %241 = math.tanh %240 : vector<2x128xf32>
    %242 = vector.extract_strided_slice %227 {offsets = [0, 384], sizes = [2, 128], strides = [1, 1]} : vector<2x512xf32> to vector<2x128xf32>
    %243 = arith.negf %242 : vector<2x128xf32>
    %244 = math.exp %243 : vector<2x128xf32>
    %cst_71 = arith.constant 1.000000e+00 : f32
    %245 = vector.broadcast %cst_71 : f32 to vector<2x128xf32>
    %246 = arith.addf %245, %244 : vector<2x128xf32>
    %247 = arith.divf %245, %246 : vector<2x128xf32>
    %248 = arith.mulf %239, %214 : vector<2x128xf32>
    %249 = arith.mulf %233, %241 : vector<2x128xf32>
    %250 = arith.addf %248, %249 : vector<2x128xf32>
    %251 = math.tanh %250 : vector<2x128xf32>
    %252 = arith.mulf %247, %251 : vector<2x128xf32>
    %253 = arith.index_cast %c6_i32 : i32 to index
    %c0_72 = arith.constant 0 : index
    %c0_73 = arith.constant 0 : index
    %254 = vector.load %arg4[%253, %c0_72, %c0_73] : memref<8x2x128xf32, #tpu.memory_space<vmem>>, vector<1x2x128xf32>
    %255 = vector.shape_cast %254 : vector<1x2x128xf32> to vector<2x128xf32>
    %256 = vector.shape_cast %252 : vector<2x128xf32> to vector<1x2x128xf32>
    tpu.vector_store %arg4[%253, %c0_72, %c0_73], %256 {strides = array<i32>} : memref<8x2x128xf32, #tpu.memory_space<vmem>>, vector<1x2x128xf32>,
    %c7_i32 = arith.constant 7 : i32
    %257 = arith.index_cast %c7_i32 : i32 to index
    %c0_74 = arith.constant 0 : index
    %c0_75 = arith.constant 0 : index
    %258 = vector.load %arg2[%257, %c0_74, %c0_75] : memref<8x2x512xf32, #tpu.memory_space<vmem>>, vector<1x2x512xf32>
    %259 = vector.shape_cast %258 : vector<1x2x512xf32> to vector<2x512xf32>
    %260 = arith.truncf %252 : vector<2x128xf32> to vector<2x128xbf16>
    %c0_76 = arith.constant 0 : index
    %c0_77 = arith.constant 0 : index
    %261 = vector.load %arg3[%c0_76, %c0_77] : memref<128x512xbf16, #tpu.memory_space<vmem>>, vector<128x512xbf16>
    %cst_78 = arith.constant dense<0.000000e+00> : vector<2x512xf32>
    %262 = tpu.matmul %260, %261, %cst_78 {dimension_numbers = #tpu.dot_dimension_numbers<[1], [0], [0], [1], [0, 0, 1, 1], [], []>} : vector<2x128xbf16>, vector<128x512xbf16>, vector<2x512xf32> -> vector<2x512xf32>
    %263 = arith.addf %259, %262 : vector<2x512xf32>
    %264 = vector.extract_strided_slice %263 {offsets = [0, 0], sizes = [2, 128], strides = [1, 1]} : vector<2x512xf32> to vector<2x128xf32>
    %265 = arith.negf %264 : vector<2x128xf32>
    %266 = math.exp %265 : vector<2x128xf32>
    %cst_79 = arith.constant 1.000000e+00 : f32
    %267 = vector.broadcast %cst_79 : f32 to vector<2x128xf32>
    %268 = arith.addf %267, %266 : vector<2x128xf32>
    %269 = arith.divf %267, %268 : vector<2x128xf32>
    %270 = vector.extract_strided_slice %263 {offsets = [0, 128], sizes = [2, 128], strides = [1, 1]} : vector<2x512xf32> to vector<2x128xf32>
    %271 = arith.negf %270 : vector<2x128xf32>
    %272 = math.exp %271 : vector<2x128xf32>
    %cst_80 = arith.constant 1.000000e+00 : f32
    %273 = vector.broadcast %cst_80 : f32 to vector<2x128xf32>
    %274 = arith.addf %273, %272 : vector<2x128xf32>
    %275 = arith.divf %273, %274 : vector<2x128xf32>
    %276 = vector.extract_strided_slice %263 {offsets = [0, 256], sizes = [2, 128], strides = [1, 1]} : vector<2x512xf32> to vector<2x128xf32>
    %277 = math.tanh %276 : vector<2x128xf32>
    %278 = vector.extract_strided_slice %263 {offsets = [0, 384], sizes = [2, 128], strides = [1, 1]} : vector<2x512xf32> to vector<2x128xf32>
    %279 = arith.negf %278 : vector<2x128xf32>
    %280 = math.exp %279 : vector<2x128xf32>
    %cst_81 = arith.constant 1.000000e+00 : f32
    %281 = vector.broadcast %cst_81 : f32 to vector<2x128xf32>
    %282 = arith.addf %281, %280 : vector<2x128xf32>
    %283 = arith.divf %281, %282 : vector<2x128xf32>
    %284 = arith.mulf %275, %250 : vector<2x128xf32>
    %285 = arith.mulf %269, %277 : vector<2x128xf32>
    %286 = arith.addf %284, %285 : vector<2x128xf32>
    %287 = math.tanh %286 : vector<2x128xf32>
    %288 = arith.mulf %283, %287 : vector<2x128xf32>
    %289 = arith.index_cast %c7_i32 : i32 to index
    %c0_82 = arith.constant 0 : index
    %c0_83 = arith.constant 0 : index
    %290 = vector.load %arg4[%289, %c0_82, %c0_83] : memref<8x2x128xf32, #tpu.memory_space<vmem>>, vector<1x2x128xf32>
    %291 = vector.shape_cast %290 : vector<1x2x128xf32> to vector<2x128xf32>
    %292 = vector.shape_cast %288 : vector<2x128xf32> to vector<1x2x128xf32>
    tpu.vector_store %arg4[%289, %c0_82, %c0_83], %292 {strides = array<i32>} : memref<8x2x128xf32, #tpu.memory_space<vmem>>, vector<1x2x128xf32>,
    %c8_i32 = arith.constant 8 : i32
    %c0_84 = arith.constant 0 : index
    %c0_85 = arith.constant 0 : index
    %293 = vector.load %arg5[%c0_84, %c0_85] : memref<2x128xf32, #tpu.memory_space<vmem>>, vector<2x128xf32>
    tpu.vector_store %arg5[%c0_84, %c0_85], %288 {strides = array<i32>} : memref<2x128xf32, #tpu.memory_space<vmem>>, vector<2x128xf32>,
    %c0_86 = arith.constant 0 : index
    %c0_87 = arith.constant 0 : index
    %294 = vector.load %arg6[%c0_86, %c0_87] : memref<2x128xf32, #tpu.memory_space<vmem>>, vector<2x128xf32>
    tpu.vector_store %arg6[%c0_86, %c0_87], %286 {strides = array<i32>} : memref<2x128xf32, #tpu.memory_space<vmem>>, vector<2x128xf32>,
    return
  }
  func.func @transform_0(%arg0: i32, %arg1: i32) -> (i32, i32, i32) {
    %c0_i32 = arith.constant 0 : i32
    %c0_i32_0 = arith.constant 0 : i32
    return %arg1, %arg0, %c0_i32 : i32, i32, i32
  }
  func.func @transform_1(%arg0: i32, %arg1: i32) -> (i32, i32) {
    %c0_i32 = arith.constant 0 : i32
    %c0_i32_0 = arith.constant 0 : i32
    %c0_i32_1 = arith.constant 0 : i32
    return %c0_i32, %c0_i32_0 : i32, i32
  }
  func.func @transform_2(%arg0: i32, %arg1: i32) -> (i32, i32, i32) {
    %c0_i32 = arith.constant 0 : i32
    %c0_i32_0 = arith.constant 0 : i32
    return %arg1, %arg0, %c0_i32 : i32, i32, i32
  }
}

</mosaic_0001>

<bundles_post_ra>
// kernel: custom_lstm_forward.2
= control target key start
LH: loop header
LB: loop body
LE: loop exit
PB: predicated region body
PF: predicated region fallthrough
CT: control target
= control target key end

     0   :  { %v3209_v1 = vmov 0   ;;  %v3210_v2 = vmov 0.0   ;;  %v3211_v36 = vmov 1983009808   ;;  %v305_v38 = vlaneseq  ;;  %s3909_s1 = inlined_call_operand.vmem [shape: bf16[128,512], index: 1, kind: input, shape index: {}]   ;;  %s3910_s0 = inlined_call_operand.vmem [shape: f32[8,2,512], index: 0, kind: input, shape index: {}]   ;;  %s3911_s2 = inlined_call_operand.vmem [shape: f32[8,2,128], index: 2, kind: output, shape index: {}]  }
   0x1   :  { %v3230_v0 = vld [vmem:[%s3909_s1 + $0x4] ss:$16 sps:$4 sm:$0xff]   ;;  %246 = vmatprep.mubr.bf16.mxu0 %v3209_v1  ;;  %287 = vmatprep.mubr.bf16.mxu1 %v3209_v1  ;;  %16 = vst [vmem:[#allocation2] sm:$0x3] %v3210_v2  ;;  %17 = vst [vmem:[#allocation3] sm:$0x3] %v3210_v2  ;;  %v303_v37 = vunpack.c.l.s4 %v3211_v36 }
   0x2   :  { %v3237_v3 = vld [vmem:[%s3909_s1 + $0xc] ss:$16 sps:$4 sm:$0xff]   ;;  %214 = vmatprep.subr.bf16.mxu0 %v3230_v0  ;;  %v3243_v4 = vld [vmem:[%s3909_s1] ss:$16 sps:$4 sm:$0xff]   ;;  %v3248_v5 = vld [vmem:[%s3909_s1 + $0x8] ss:$16 sps:$4 sm:$0xff]  }
   0x3   :  { %255 = vmatprep.subr.bf16.mxu1 %v3237_v3  ;;  %v3254_v6 = vld [vmem:[%s3909_s1 + $0x24] ss:$16 sps:$4 sm:$0xff]   ;;  %215 = vmatpush1.bf16.msra.mxu0 %v3243_v4  ;;  %v3261_v7 = vld [vmem:[%s3909_s1 + $0x2c] ss:$16 sps:$4 sm:$0xff]   ;;  %v3266_v8 = vld [vmem:[%s3909_s1 + $0x20] ss:$16 sps:$4 sm:$0xff]   ;;  %v304_v39 = vunpack.c.0.s8 %v303_v37 }
   0x4   :  { %256 = vmatpush1.bf16.msra.mxu1 %v3248_v5  ;;  %216 = vmatprep.subr.bf16.mxu0 %v3254_v6  ;;  %v3272_v9 = vld [vmem:[%s3909_s1 + $0x28] ss:$16 sps:$4 sm:$0xff]   ;;  %v3278_v10 = vld [vmem:[%s3909_s1 + $0x44] ss:$16 sps:$4 sm:$0xff]   ;;  %v3283_v11 = vld [vmem:[%s3909_s1 + $0x4c] ss:$16 sps:$4 sm:$0xff]  }
   0x5   :  { %257 = vmatprep.subr.bf16.mxu1 %v3261_v7  ;;  %v3288_v12 = vld [vmem:[%s3909_s1 + $0x40] ss:$16 sps:$4 sm:$0xff]   ;;  %v3293_v13 = vld [vmem:[%s3909_s1 + $0x48] ss:$16 sps:$4 sm:$0xff]   ;;  %v3300_v14 = vld [vmem:[%s3909_s1 + $0x64] ss:$16 sps:$4 sm:$0xff]  }
   0x6   :  { %v3307_v15 = vld [vmem:[%s3909_s1 + $0x6c] ss:$16 sps:$4 sm:$0xff]   ;;  %v3312_v16 = vld [vmem:[%s3909_s1 + $0x60] ss:$16 sps:$4 sm:$0xff]   ;;  %v3319_v17 = vld [vmem:[%s3909_s1 + $0x68] ss:$16 sps:$4 sm:$0xff]  }
   0x7   :  { %217 = vmatpush1.bf16.msra.mxu0 %v3266_v8  ;;  %v3324_v18 = vld [vmem:[%s3909_s1 + $0x84] ss:$16 sps:$4 sm:$0xff]   ;;  %v3331_v19 = vld [vmem:[%s3909_s1 + $0x8c] ss:$16 sps:$4 sm:$0xff]   ;;  %v3336_v20 = vld [vmem:[%s3909_s1 + $0x80] ss:$16 sps:$4 sm:$0xff]  }
   0x8   :  { %258 = vmatpush1.bf16.msra.mxu1 %v3272_v9  ;;  %218 = vmatprep.subr.bf16.mxu0 %v3278_v10  ;;  %v3341_v21 = vld [vmem:[%s3909_s1 + $0x88] ss:$16 sps:$4 sm:$0xff]   ;;  %v3348_v22 = vld [vmem:[%s3909_s1 + $0xa4] ss:$16 sps:$4 sm:$0xff]   ;;  %v3355_v23 = vld [vmem:[%s3909_s1 + $0xac] ss:$16 sps:$4 sm:$0xff]  }
   0x9   :  { %259 = vmatprep.subr.bf16.mxu1 %v3283_v11  ;;  %v3362_v24 = vld [vmem:[%s3909_s1 + $0xa0] ss:$16 sps:$4 sm:$0xff]   ;;  %v3367_v25 = vld [vmem:[%s3909_s1 + $0xa8] ss:$16 sps:$4 sm:$0xff]   ;;  %v3374_v26 = vld [vmem:[%s3909_s1 + $0xc4] ss:$16 sps:$4 sm:$0xff]  }
   0xa   :  { %v3379_v27 = vld [vmem:[%s3909_s1 + $0xcc] ss:$16 sps:$4 sm:$0xff]   ;;  %v3384_v28 = vld [vmem:[%s3909_s1 + $0xc0] ss:$16 sps:$4 sm:$0xff]   ;;  %v3389_v29 = vld [vmem:[%s3909_s1 + $0xc8] ss:$16 sps:$4 sm:$0xff]  }
   0xb   :  { %219 = vmatpush1.bf16.msra.mxu0 %v3288_v12  ;;  %v3394_v30 = vld [vmem:[%s3909_s1 + $0xe4] ss:$16 sps:$4 sm:$0xff]   ;;  %v3399_v31 = vld [vmem:[%s3909_s1 + $0xec] ss:$16 sps:$4 sm:$0xff]   ;;  %v3408_v32 = vld [vmem:[%s3909_s1 + $0xe0] ss:$16 sps:$4 sm:$0xff]  }
   0xc   :  { %260 = vmatpush1.bf16.msra.mxu1 %v3293_v13  ;;  %220 = vmatprep.subr.bf16.mxu0 %v3300_v14  ;;  %v3413_v33 = vld [vmem:[%s3909_s1 + $0xe8] ss:$16 sps:$4 sm:$0xff]   ;;  %v18_v34 = vld [vmem:[#allocation2] sm:$0x3]  ;;  %v306_v40 = vshrl.u32 %v305_v38, 7 }
   0xd   :  { %261 = vmatprep.subr.bf16.mxu1 %v3307_v15  ;;  %v21_v35 = vpack.c.bf16 %v18_v34, %v18_v34  ;;  %v20_v54 = vld [vmem:[%s3910_s0] sm:$0xff] }
   0xe   :  { %v3457_v43 = vsub.s32 %v304_v39, %v306_v40  ;;  %v19_v38 = vld [vmem:[#allocation3] sm:$0x3] }
   0xf   :  { %221 = vmatpush1.bf16.msra.mxu0 %v3312_v16 }
  0x10   :  { %262 = vmatpush1.bf16.msra.mxu1 %v3319_v17  ;;  %222 = vmatprep.subr.bf16.mxu0 %v3324_v18 }
  0x11   :  { %263 = vmatprep.subr.bf16.mxu1 %v3331_v19 }
  0x13   :  { %223 = vmatpush1.bf16.msra.mxu0 %v3336_v20 }
  0x14   :  { %264 = vmatpush1.bf16.msra.mxu1 %v3341_v21  ;;  %224 = vmatprep.subr.bf16.mxu0 %v3348_v22 }
  0x15   :  { %265 = vmatprep.subr.bf16.mxu1 %v3355_v23 }
  0x17   :  { %225 = vmatpush1.bf16.msra.mxu0 %v3362_v24 }
  0x18   :  { %266 = vmatpush1.bf16.msra.mxu1 %v3367_v25  ;;  %226 = vmatprep.subr.bf16.mxu0 %v3374_v26 }
  0x19   :  { %267 = vmatprep.subr.bf16.mxu1 %v3379_v27 }
  0x1b   :  { %227 = vmatpush1.bf16.msra.mxu0 %v3384_v28 }
  0x1c   :  { %268 = vmatpush1.bf16.msra.mxu1 %v3389_v29  ;;  %228 = vmatprep.subr.bf16.mxu0 %v3394_v30 }
  0x1d   :  { %269 = vmatprep.subr.bf16.mxu1 %v3399_v31 }
  0x1f   :  { %229 = vmatpush1.bf16.msra.mxu0 %v3408_v32 }
  0x20   :  { %270 = vmatpush1.bf16.msra.mxu1 %v3413_v33  ;;  %546 = vmatprep.subr.bf16.mxu0 %v3230_v0 }
  0x21   :  { %587 = vmatprep.subr.bf16.mxu1 %v3237_v3 }
  0x22   :  { %247 = vmatmul.mubr.bf16.vlgmr.msra.gmra.mrb[0].mxu0 %v21_v35 }
  0x23   :  { %288 = vmatmul.mubr.bf16.vlgmr.msra.gmra.mrb[0].mxu1 %v21_v35  ;;  %547 = vmatpush1.bf16.msra.mxu0 %v3243_v4 }
  0x24   :  { %588 = vmatpush1.bf16.msra.mxu1 %v3248_v5  ;;  %548 = vmatprep.subr.bf16.mxu0 %v3254_v6 }
  0x25   :  { %589 = vmatprep.subr.bf16.mxu1 %v3261_v7  ;;  %578 = vmatprep.mubr.bf16.mxu0 %v3209_v1 }
  0x26   :  { %619 = vmatprep.mubr.bf16.mxu1 %v3209_v1 }
  0x27   :  { %549 = vmatpush1.bf16.msra.mxu0 %v3266_v8 }
  0x28   :  { %590 = vmatpush1.bf16.msra.mxu1 %v3272_v9  ;;  %550 = vmatprep.subr.bf16.mxu0 %v3278_v10 }
  0x29   :  { %591 = vmatprep.subr.bf16.mxu1 %v3283_v11 }
  0x2b   :  { %551 = vmatpush1.bf16.msra.mxu0 %v3288_v12 }
  0x2c   :  { %592 = vmatpush1.bf16.msra.mxu1 %v3293_v13  ;;  %552 = vmatprep.subr.bf16.mxu0 %v3300_v14 }
  0x2d   :  { %593 = vmatprep.subr.bf16.mxu1 %v3307_v15 }
  0x2f   :  { %553 = vmatpush1.bf16.msra.mxu0 %v3312_v16 }
  0x30   :  { %594 = vmatpush1.bf16.msra.mxu1 %v3319_v17  ;;  %554 = vmatprep.subr.bf16.mxu0 %v3324_v18 }
  0x31   :  { %595 = vmatprep.subr.bf16.mxu1 %v3331_v19 }
  0x33   :  { %555 = vmatpush1.bf16.msra.mxu0 %v3336_v20 }
  0x34   :  { %596 = vmatpush1.bf16.msra.mxu1 %v3341_v21  ;;  %556 = vmatprep.subr.bf16.mxu0 %v3348_v22 }
  0x35   :  { %597 = vmatprep.subr.bf16.mxu1 %v3355_v23 }
  0x37   :  { %557 = vmatpush1.bf16.msra.mxu0 %v3362_v24 }
  0x38   :  { %598 = vmatpush1.bf16.msra.mxu1 %v3367_v25  ;;  %558 = vmatprep.subr.bf16.mxu0 %v3374_v26 }
  0x39   :  { %599 = vmatprep.subr.bf16.mxu1 %v3379_v27 }
  0x3b   :  { %559 = vmatpush1.bf16.msra.mxu0 %v3384_v28 }
  0x3c   :  { %600 = vmatpush1.bf16.msra.mxu1 %v3389_v29  ;;  %560 = vmatprep.subr.bf16.mxu0 %v3394_v30 }
  0x3d   :  { %601 = vmatprep.subr.bf16.mxu1 %v3399_v31 }
  0x3f   :  { %561 = vmatpush1.bf16.msra.mxu0 %v3408_v32 }
  0x40   :  { %602 = vmatpush1.bf16.msra.mxu1 %v3413_v33  ;;  %879 = vmatprep.subr.bf16.mxu0 %v3230_v0 }
  0x41   :  { %920 = vmatprep.subr.bf16.mxu1 %v3237_v3 }
  0xf5   :  { %v248_v41 = vpop.f32.mrb[0].mxu0 }
  0xf6   :  { %v289_v42 = vpop.f32.mrb[0].mxu1  ;;  %v250_v44 = vpop.f32.mrb[1].mxu0 }
  0xf7   :  { %v291_v45 = vpop.f32.mrb[1].mxu1  ;;  %v300_v46 = vcombine.low %v248_v41, %v250_v44  ;;  %v252_v48 = vpop.f32.mrb[2].mxu0 }
  0xf8   :  { %v301_v47 = vcombine.low %v289_v42, %v291_v45  ;;  %v293_v49 = vpop.f32.mrb[2].mxu1  ;;  %v253_v50 = vpop.f32.mrb[3].mxu0 }
  0xf9   :  { %v294_v51 = vpop.f32.mrb[3].mxu1  ;;  %v308_v52 = vrot.slane %v300_v46, %v3457_v43 }
  0xfa   :  { %v315_v53 = vrot.slane %v301_v47, %v3457_v43 }
  0xfc   :  { %v316_v55 = vcombine.low %v308_v52, %v315_v53 }
  0xfe   :  { %v318_v56 = vadd.f32 %v316_v55, %v20_v54 }
 0x100   :  { %v2720_v57 = vmul.f32 -1.442695, %v318_v56  ;;  %v326_v58 = vrot.slane %v318_v56, 2  ;;  %v337_v60 = vrot.slane %v318_v56, 6  ;;  %v334_v63 = vrot.slane %v318_v56, 4 }
 0x102   :  { %3081 = vpow2.f32 %v2720_v57  ;;  %v2721_v59 = vmul.f32 -1.442695, %v326_v58  ;;  %v2722_v61 = vmul.f32 -1.442695, %v337_v60 }
 0x104   :  { %3083 = vpow2.f32 %v2721_v59 }
 0x105   :  { %3085 = vpow2.f32 %v2722_v61 }
 0x10c   :  { %v3082_v62 = vpop.eup %3081 }
 0x10d   :  { %v322_v2 = vadd.f32 1.0, %v3082_v62 }
 0x10e   :  { %v3084_v34 = vpop.eup %3083 }
 0x10f   :  { %3087 = vrcp.f32 %v322_v2  ;;  %v331_v35 = vadd.f32 1.0, %v3084_v34  ;;  %v3086_v36 = vpop.eup %3085 }
 0x110   :  { %3089 = vtanh.f32 %v334_v63  ;;  %v342_v41 = vadd.f32 1.0, %v3086_v36 }
 0x111   :  { %3091 = vrcp.f32 %v331_v35 }
 0x112   :  { %3093 = vrcp.f32 %v342_v41 }
 0x119   :  { %v3088_v37 = vpop.eup %3087 }
 0x11a   :  { %v3090_v39 = vpop.eup %3089 }
 0x11b   :  { %v3092_v40 = vpop.eup %3091  ;;  %v346_v44 = vmul.f32 %v3090_v39, %v3088_v37 }
 0x11c   :  { %v345_v42 = vmul.f32 %v3092_v40, %v19_v38  ;;  %v3094_v46 = vpop.eup %3093 }
 0x11e   :  { %v3464_v45 = vadd.f32 %v346_v44, %v345_v42 }
 0x120   :  { %3095 = vtanh.f32 %v3464_v45 }
 0x12a   :  { %v3096_v47 = vpop.eup %3095 }
 0x12b   :  { %v349_v48 = vmul.f32 %v3096_v47, %v3094_v46 }
 0x12d   :  { %350 = vst [vmem:[%s3911_s2] sm:$0x3] %v349_v48  ;;  %v353_v49 = vpack.c.bf16 %v349_v48, %v349_v48 }
 0x12f   :  { %579 = vmatmul.mubr.bf16.vlgmr.msra.gmra.mrb[4].mxu0 %v353_v49  ;;  %620 = vmatmul.mubr.bf16.vlgmr.msra.gmra.mrb[4].mxu1 %v353_v49 }
 0x130   :  { %880 = vmatpush1.bf16.msra.mxu0 %v3243_v4  ;;  %921 = vmatpush1.bf16.msra.mxu1 %v3248_v5 }
 0x131   :  { %881 = vmatprep.subr.bf16.mxu0 %v3254_v6  ;;  %922 = vmatprep.subr.bf16.mxu1 %v3261_v7 }
 0x132   :  { %911 = vmatprep.mubr.bf16.mxu0 %v3209_v1  ;;  %952 = vmatprep.mubr.bf16.mxu1 %v3209_v1 }
 0x134   :  { %882 = vmatpush1.bf16.msra.mxu0 %v3266_v8  ;;  %923 = vmatpush1.bf16.msra.mxu1 %v3272_v9 }
 0x135   :  { %883 = vmatprep.subr.bf16.mxu0 %v3278_v10  ;;  %924 = vmatprep.subr.bf16.mxu1 %v3283_v11 }
 0x138   :  { %884 = vmatpush1.bf16.msra.mxu0 %v3288_v12  ;;  %925 = vmatpush1.bf16.msra.mxu1 %v3293_v13 }
 0x139   :  { %885 = vmatprep.subr.bf16.mxu0 %v3300_v14  ;;  %926 = vmatprep.subr.bf16.mxu1 %v3307_v15 }
 0x13c   :  { %886 = vmatpush1.bf16.msra.mxu0 %v3312_v16  ;;  %927 = vmatpush1.bf16.msra.mxu1 %v3319_v17 }
 0x13d   :  { %887 = vmatprep.subr.bf16.mxu0 %v3324_v18  ;;  %928 = vmatprep.subr.bf16.mxu1 %v3331_v19 }
 0x140   :  { %888 = vmatpush1.bf16.msra.mxu0 %v3336_v20  ;;  %929 = vmatpush1.bf16.msra.mxu1 %v3341_v21 }
 0x141   :  { %889 = vmatprep.subr.bf16.mxu0 %v3348_v22  ;;  %930 = vmatprep.subr.bf16.mxu1 %v3355_v23 }
 0x144   :  { %890 = vmatpush1.bf16.msra.mxu0 %v3362_v24  ;;  %931 = vmatpush1.bf16.msra.mxu1 %v3367_v25 }
 0x145   :  { %891 = vmatprep.subr.bf16.mxu0 %v3374_v26  ;;  %932 = vmatprep.subr.bf16.mxu1 %v3379_v27 }
 0x148   :  { %892 = vmatpush1.bf16.msra.mxu0 %v3384_v28  ;;  %933 = vmatpush1.bf16.msra.mxu1 %v3389_v29 }
 0x149   :  { %893 = vmatprep.subr.bf16.mxu0 %v3394_v30  ;;  %934 = vmatprep.subr.bf16.mxu1 %v3399_v31 }
 0x14c   :  { %894 = vmatpush1.bf16.msra.mxu0 %v3408_v32  ;;  %935 = vmatpush1.bf16.msra.mxu1 %v3413_v33 }
 0x14d   :  { %1212 = vmatprep.subr.bf16.mxu0 %v3230_v0  ;;  %1253 = vmatprep.subr.bf16.mxu1 %v3237_v3  ;;  %v2723_v0 = vld [vmem:[%s3910_s0 + $0x8] sm:$0xff] }
 0x202   :  { %v580_v50 = vpop.f32.mrb[4].mxu0  ;;  %v621_v51 = vpop.f32.mrb[4].mxu1 }
 0x203   :  { %v582_v52 = vpop.f32.mrb[5].mxu0  ;;  %v623_v53 = vpop.f32.mrb[5].mxu1 }
 0x204   :  { %v632_v54 = vcombine.low %v580_v50, %v582_v52  ;;  %v633_v55 = vcombine.low %v621_v51, %v623_v53  ;;  %v584_v56 = vpop.f32.mrb[6].mxu0  ;;  %v625_v57 = vpop.f32.mrb[6].mxu1 }
 0x205   :  { %v585_v58 = vpop.f32.mrb[7].mxu0  ;;  %v626_v59 = vpop.f32.mrb[7].mxu1 }
 0x206   :  { %v640_v60 = vrot.slane %v632_v54, %v3457_v43  ;;  %v647_v61 = vrot.slane %v633_v55, %v3457_v43 }
 0x208   :  { %v648_v62 = vcombine.low %v640_v60, %v647_v61 }
 0x20a   :  { %v650_v3 = vadd.f32 %v2723_v0, %v648_v62  ;;  %v3565_v0 = vld [vmem:[%s3909_s1 + $0x4] ss:$16 sps:$4 sm:$0xff]   ;;  %v3570_v62 = vld [vmem:[%s3909_s1 + $0xc] ss:$16 sps:$4 sm:$0xff]  }
 0x20c   :  { %v2756_v63 = vmul.f32 -1.442695, %v650_v3  ;;  %v658_v2 = vrot.slane %v650_v3, 2  ;;  %v669_v35 = vrot.slane %v650_v3, 6  ;;  %v666_v38 = vrot.slane %v650_v3, 4 }
 0x20d   :  { %v3575_v3 = vld [vmem:[%s3909_s1] ss:$16 sps:$4 sm:$0xff]  }
 0x20e   :  { %3097 = vpow2.f32 %v2756_v63  ;;  %v2757_v34 = vmul.f32 -1.442695, %v658_v2  ;;  %v2758_v36 = vmul.f32 -1.442695, %v669_v35  ;;  %v3580_v63 = vld [vmem:[%s3909_s1 + $0x8] ss:$16 sps:$4 sm:$0xff]  }
 0x20f   :  { %v3589_v2 = vld [vmem:[%s3909_s1 + $0x20] ss:$16 sps:$4 sm:$0xff]   ;;  %v3599_v35 = vld [vmem:[%s3909_s1 + $0x28] ss:$16 sps:$4 sm:$0xff]  }
 0x210   :  { %3099 = vpow2.f32 %v2757_v34  ;;  %v3594_v34 = vld [vmem:[%s3909_s1 + $0x24] ss:$16 sps:$4 sm:$0xff]  }
 0x211   :  { %3101 = vpow2.f32 %v2758_v36  ;;  %v3604_v36 = vld [vmem:[%s3909_s1 + $0x2c] ss:$16 sps:$4 sm:$0xff]  }
 0x218   :  { %v3098_v37 = vpop.eup %3097 }
 0x219   :  { %v654_v39 = vadd.f32 1.0, %v3098_v37  ;;  %v3609_v37 = vld [vmem:[%s3909_s1 + $0x44] ss:$16 sps:$4 sm:$0xff]  }
 0x21a   :  { %v3100_v40 = vpop.eup %3099 }
 0x21b   :  { %3103 = vrcp.f32 %v654_v39  ;;  %v663_v41 = vadd.f32 1.0, %v3100_v40  ;;  %v3102_v42 = vpop.eup %3101  ;;  %v3622_v39 = vld [vmem:[%s3909_s1 + $0x40] ss:$16 sps:$4 sm:$0xff]   ;;  %v3629_v40 = vld [vmem:[%s3909_s1 + $0x48] ss:$16 sps:$4 sm:$0xff]  }
 0x21c   :  { %3105 = vtanh.f32 %v666_v38  ;;  %v674_v48 = vadd.f32 1.0, %v3102_v42  ;;  %v3615_v38 = vld [vmem:[%s3909_s1 + $0x4c] ss:$16 sps:$4 sm:$0xff]  }
 0x21d   :  { %3107 = vrcp.f32 %v663_v41  ;;  %v3634_v41 = vld [vmem:[%s3909_s1 + $0x64] ss:$16 sps:$4 sm:$0xff]   ;;  %v3640_v42 = vld [vmem:[%s3909_s1 + $0x6c] ss:$16 sps:$4 sm:$0xff]  }
 0x21e   :  { %3109 = vrcp.f32 %v674_v48  ;;  %v3664_v48 = vld [vmem:[%s3909_s1 + $0x8c] ss:$16 sps:$4 sm:$0xff]  }
 0x225   :  { %v3104_v44 = vpop.eup %3103 }
 0x226   :  { %v3106_v46 = vpop.eup %3105 }
 0x227   :  { %v3108_v47 = vpop.eup %3107  ;;  %v678_v50 = vmul.f32 %v3106_v46, %v3104_v44  ;;  %v3646_v44 = vld [vmem:[%s3909_s1 + $0x60] ss:$16 sps:$4 sm:$0xff]   ;;  %v3653_v46 = vld [vmem:[%s3909_s1 + $0x68] ss:$16 sps:$4 sm:$0xff]  }
 0x228   :  { %v677_v49 = vmul.f32 %v3108_v47, %v3464_v45  ;;  %v3110_v52 = vpop.eup %3109  ;;  %v3658_v47 = vld [vmem:[%s3909_s1 + $0x84] ss:$16 sps:$4 sm:$0xff]  }
 0x22a   :  { %v3510_v51 = vadd.f32 %v678_v50, %v677_v49  ;;  %v3670_v49 = vld [vmem:[%s3909_s1 + $0x80] ss:$16 sps:$4 sm:$0xff]   ;;  %v3677_v50 = vld [vmem:[%s3909_s1 + $0x88] ss:$16 sps:$4 sm:$0xff]  }
 0x22c   :  { %3111 = vtanh.f32 %v3510_v51 }
 0x236   :  { %v3112_v53 = vpop.eup %3111 }
 0x237   :  { %v681_v54 = vmul.f32 %v3112_v53, %v3110_v52  ;;  %v3688_v52 = vld [vmem:[%s3909_s1 + $0xac] ss:$16 sps:$4 sm:$0xff]   ;;  %v3694_v53 = vld [vmem:[%s3909_s1 + $0xa0] ss:$16 sps:$4 sm:$0xff]  }
 0x239   :  { %2759 = vst [vmem:[%s3911_s2 + $0x2] sm:$0x3] %v681_v54  ;;  %v686_v55 = vpack.c.bf16 %v681_v54, %v681_v54  ;;  %v3701_v54 = vld [vmem:[%s3909_s1 + $0xa8] ss:$16 sps:$4 sm:$0xff]  }
 0x23b   :  { %912 = vmatmul.mubr.bf16.vlgmr.msra.gmra.mrb[8].mxu0 %v686_v55  ;;  %953 = vmatmul.mubr.bf16.vlgmr.msra.gmra.mrb[8].mxu1 %v686_v55  ;;  %v3706_v55 = vld [vmem:[%s3909_s1 + $0xc4] ss:$16 sps:$4 sm:$0xff]  }
 0x23c   :  { %1213 = vmatpush1.bf16.msra.mxu0 %v3243_v4  ;;  %1254 = vmatpush1.bf16.msra.mxu1 %v3248_v5 }
 0x23d   :  { %1214 = vmatprep.subr.bf16.mxu0 %v3254_v6  ;;  %1255 = vmatprep.subr.bf16.mxu1 %v3261_v7 }
 0x23e   :  { %1244 = vmatprep.mubr.bf16.mxu0 %v3209_v1  ;;  %1285 = vmatprep.mubr.bf16.mxu1 %v3209_v1 }
 0x240   :  { %1215 = vmatpush1.bf16.msra.mxu0 %v3266_v8  ;;  %1256 = vmatpush1.bf16.msra.mxu1 %v3272_v9 }
 0x241   :  { %1216 = vmatprep.subr.bf16.mxu0 %v3278_v10  ;;  %1257 = vmatprep.subr.bf16.mxu1 %v3283_v11 }
 0x244   :  { %1217 = vmatpush1.bf16.msra.mxu0 %v3288_v12  ;;  %1258 = vmatpush1.bf16.msra.mxu1 %v3293_v13 }
 0x245   :  { %1218 = vmatprep.subr.bf16.mxu0 %v3300_v14  ;;  %1259 = vmatprep.subr.bf16.mxu1 %v3307_v15 }
 0x248   :  { %1219 = vmatpush1.bf16.msra.mxu0 %v3312_v16  ;;  %1260 = vmatpush1.bf16.msra.mxu1 %v3319_v17  ;;  %v2760_v16 = vld [vmem:[%s3910_s0 + $0x10] sm:$0xff] }
 0x249   :  { %1220 = vmatprep.subr.bf16.mxu0 %v3324_v18  ;;  %1261 = vmatprep.subr.bf16.mxu1 %v3331_v19 }
 0x24c   :  { %1221 = vmatpush1.bf16.msra.mxu0 %v3336_v20  ;;  %1262 = vmatpush1.bf16.msra.mxu1 %v3341_v21 }
 0x24d   :  { %1222 = vmatprep.subr.bf16.mxu0 %v3348_v22  ;;  %1263 = vmatprep.subr.bf16.mxu1 %v3355_v23 }
 0x250   :  { %1223 = vmatpush1.bf16.msra.mxu0 %v3362_v24  ;;  %1264 = vmatpush1.bf16.msra.mxu1 %v3367_v25 }
 0x251   :  { %1224 = vmatprep.subr.bf16.mxu0 %v3374_v26  ;;  %1265 = vmatprep.subr.bf16.mxu1 %v3379_v27 }
 0x254   :  { %1225 = vmatpush1.bf16.msra.mxu0 %v3384_v28  ;;  %1266 = vmatpush1.bf16.msra.mxu1 %v3389_v29 }
 0x255   :  { %1226 = vmatprep.subr.bf16.mxu0 %v3394_v30  ;;  %1267 = vmatprep.subr.bf16.mxu1 %v3399_v31 }
 0x258   :  { %1227 = vmatpush1.bf16.msra.mxu0 %v3408_v32  ;;  %1268 = vmatpush1.bf16.msra.mxu1 %v3413_v33 }
 0x259   :  { %1545 = vmatprep.subr.bf16.mxu0 %v3565_v0  ;;  %1586 = vmatprep.subr.bf16.mxu1 %v3570_v62 }
 0x30e   :  { %v913_v4 = vpop.f32.mrb[8].mxu0  ;;  %v954_v5 = vpop.f32.mrb[8].mxu1 }
 0x30f   :  { %v915_v6 = vpop.f32.mrb[9].mxu0  ;;  %v956_v7 = vpop.f32.mrb[9].mxu1 }
 0x310   :  { %v965_v8 = vcombine.low %v913_v4, %v915_v6  ;;  %v966_v9 = vcombine.low %v954_v5, %v956_v7  ;;  %v917_v10 = vpop.f32.mrb[10].mxu0  ;;  %v958_v11 = vpop.f32.mrb[10].mxu1  ;;  %v3712_v4 = vld [vmem:[%s3909_s1 + $0xcc] ss:$16 sps:$4 sm:$0xff]   ;;  %v3718_v5 = vld [vmem:[%s3909_s1 + $0xc0] ss:$16 sps:$4 sm:$0xff]  }
 0x311   :  { %v918_v12 = vpop.f32.mrb[11].mxu0  ;;  %v959_v13 = vpop.f32.mrb[11].mxu1  ;;  %v3725_v6 = vld [vmem:[%s3909_s1 + $0xc8] ss:$16 sps:$4 sm:$0xff]   ;;  %v3730_v7 = vld [vmem:[%s3909_s1 + $0xe4] ss:$16 sps:$4 sm:$0xff]  }
 0x312   :  { %v973_v14 = vrot.slane %v965_v8, %v3457_v43  ;;  %v980_v15 = vrot.slane %v966_v9, %v3457_v43  ;;  %v3736_v8 = vld [vmem:[%s3909_s1 + $0xec] ss:$16 sps:$4 sm:$0xff]   ;;  %v3742_v9 = vld [vmem:[%s3909_s1 + $0xe0] ss:$16 sps:$4 sm:$0xff]   ;;  %v3749_v10 = vld [vmem:[%s3909_s1 + $0xe8] ss:$16 sps:$4 sm:$0xff]  }
 0x314   :  { %v981_v17 = vcombine.low %v973_v14, %v980_v15 }
 0x316   :  { %v983_v18 = vadd.f32 %v2760_v16, %v981_v17 }
 0x318   :  { %v2793_v19 = vmul.f32 -1.442695, %v983_v18  ;;  %v991_v20 = vrot.slane %v983_v18, 2  ;;  %v1002_v22 = vrot.slane %v983_v18, 6  ;;  %v999_v25 = vrot.slane %v983_v18, 4 }
 0x31a   :  { %3113 = vpow2.f32 %v2793_v19  ;;  %v2794_v21 = vmul.f32 -1.442695, %v991_v20  ;;  %v2795_v23 = vmul.f32 -1.442695, %v1002_v22 }
 0x31c   :  { %3115 = vpow2.f32 %v2794_v21 }
 0x31d   :  { %3117 = vpow2.f32 %v2795_v23  ;;  %v2797_v23 = vld [vmem:[%s3910_s0 + $0x18] sm:$0xff] }
 0x324   :  { %v3114_v24 = vpop.eup %3113 }
 0x325   :  { %v987_v26 = vadd.f32 1.0, %v3114_v24 }
 0x326   :  { %v3116_v27 = vpop.eup %3115 }
 0x327   :  { %3119 = vrcp.f32 %v987_v26  ;;  %v996_v28 = vadd.f32 1.0, %v3116_v27  ;;  %v3118_v29 = vpop.eup %3117 }
 0x328   :  { %3121 = vtanh.f32 %v999_v25  ;;  %v1007_v33 = vadd.f32 1.0, %v3118_v29 }
 0x329   :  { %3123 = vrcp.f32 %v996_v28 }
 0x32a   :  { %3125 = vrcp.f32 %v1007_v33 }
 0x331   :  { %v3120_v30 = vpop.eup %3119 }
 0x332   :  { %v3122_v31 = vpop.eup %3121 }
 0x333   :  { %v3124_v32 = vpop.eup %3123  ;;  %v1011_v56 = vmul.f32 %v3122_v31, %v3120_v30 }
 0x334   :  { %v1010_v45 = vmul.f32 %v3124_v32, %v3510_v51  ;;  %v3126_v58 = vpop.eup %3125  ;;  %v3682_v51 = vld [vmem:[%s3909_s1 + $0xa4] ss:$16 sps:$4 sm:$0xff]  }
 0x336   :  { %v3554_v57 = vadd.f32 %v1011_v56, %v1010_v45 }
 0x338   :  { %3127 = vtanh.f32 %v3554_v57 }
 0x342   :  { %v3128_v59 = vpop.eup %3127 }
 0x343   :  { %v1014_v60 = vmul.f32 %v3128_v59, %v3126_v58 }
 0x345   :  { %2796 = vst [vmem:[%s3911_s2 + $0x4] sm:$0x3] %v1014_v60  ;;  %v1019_v61 = vpack.c.bf16 %v1014_v60, %v1014_v60 }
 0x347   :  { %1245 = vmatmul.mubr.bf16.vlgmr.msra.gmra.mrb[12].mxu0 %v1019_v61  ;;  %1286 = vmatmul.mubr.bf16.vlgmr.msra.gmra.mrb[12].mxu1 %v1019_v61 }
 0x348   :  { %1577 = vmatprep.mubr.bf16.mxu0 %v3209_v1  ;;  %1618 = vmatprep.mubr.bf16.mxu1 %v3209_v1 }
 0x349   :  { %1546 = vmatpush1.bf16.msra.mxu0 %v3575_v3  ;;  %1587 = vmatpush1.bf16.msra.mxu1 %v3580_v63 }
 0x34a   :  { %1547 = vmatprep.subr.bf16.mxu0 %v3594_v34  ;;  %1588 = vmatprep.subr.bf16.mxu1 %v3604_v36 }
 0x34d   :  { %1548 = vmatpush1.bf16.msra.mxu0 %v3589_v2  ;;  %1589 = vmatpush1.bf16.msra.mxu1 %v3599_v35 }
 0x34e   :  { %1549 = vmatprep.subr.bf16.mxu0 %v3609_v37  ;;  %1590 = vmatprep.subr.bf16.mxu1 %v3615_v38 }
 0x351   :  { %1550 = vmatpush1.bf16.msra.mxu0 %v3622_v39  ;;  %1591 = vmatpush1.bf16.msra.mxu1 %v3629_v40 }
 0x352   :  { %1551 = vmatprep.subr.bf16.mxu0 %v3634_v41  ;;  %1592 = vmatprep.subr.bf16.mxu1 %v3640_v42 }
 0x355   :  { %1552 = vmatpush1.bf16.msra.mxu0 %v3646_v44  ;;  %1593 = vmatpush1.bf16.msra.mxu1 %v3653_v46 }
 0x356   :  { %1553 = vmatprep.subr.bf16.mxu0 %v3658_v47  ;;  %1594 = vmatprep.subr.bf16.mxu1 %v3664_v48 }
 0x359   :  { %1554 = vmatpush1.bf16.msra.mxu0 %v3670_v49  ;;  %1595 = vmatpush1.bf16.msra.mxu1 %v3677_v50 }
 0x35a   :  { %1555 = vmatprep.subr.bf16.mxu0 %v3682_v51  ;;  %1596 = vmatprep.subr.bf16.mxu1 %v3688_v52 }
 0x35d   :  { %1556 = vmatpush1.bf16.msra.mxu0 %v3694_v53  ;;  %1597 = vmatpush1.bf16.msra.mxu1 %v3701_v54 }
 0x35e   :  { %1557 = vmatprep.subr.bf16.mxu0 %v3706_v55  ;;  %1598 = vmatprep.subr.bf16.mxu1 %v3712_v4 }
 0x361   :  { %1558 = vmatpush1.bf16.msra.mxu0 %v3718_v5  ;;  %1599 = vmatpush1.bf16.msra.mxu1 %v3725_v6 }
 0x362   :  { %1559 = vmatprep.subr.bf16.mxu0 %v3730_v7  ;;  %1600 = vmatprep.subr.bf16.mxu1 %v3736_v8 }
 0x365   :  { %1560 = vmatpush1.bf16.msra.mxu0 %v3742_v9  ;;  %1601 = vmatpush1.bf16.msra.mxu1 %v3749_v10 }
 0x366   :  { %1878 = vmatprep.subr.bf16.mxu0 %v3565_v0  ;;  %1919 = vmatprep.subr.bf16.mxu1 %v3570_v62 }
 0x41a   :  { %v1246_v11 = vpop.f32.mrb[12].mxu0  ;;  %v1287_v12 = vpop.f32.mrb[12].mxu1 }
 0x41b   :  { %v1248_v13 = vpop.f32.mrb[13].mxu0  ;;  %v1289_v14 = vpop.f32.mrb[13].mxu1 }
 0x41c   :  { %v1298_v15 = vcombine.low %v1246_v11, %v1248_v13  ;;  %v1299_v16 = vcombine.low %v1287_v12, %v1289_v14  ;;  %v1250_v17 = vpop.f32.mrb[14].mxu0  ;;  %v1291_v18 = vpop.f32.mrb[14].mxu1 }
 0x41d   :  { %v1251_v19 = vpop.f32.mrb[15].mxu0  ;;  %v1292_v20 = vpop.f32.mrb[15].mxu1 }
 0x41e   :  { %v1306_v21 = vrot.slane %v1298_v15, %v3457_v43  ;;  %v1313_v22 = vrot.slane %v1299_v16, %v3457_v43 }
 0x420   :  { %v1314_v24 = vcombine.low %v1306_v21, %v1313_v22 }
 0x422   :  { %v1316_v25 = vadd.f32 %v2797_v23, %v1314_v24 }
 0x424   :  { %v2830_v26 = vmul.f32 -1.442695, %v1316_v25  ;;  %v1324_v27 = vrot.slane %v1316_v25, 2  ;;  %v1335_v29 = vrot.slane %v1316_v25, 6  ;;  %v1332_v32 = vrot.slane %v1316_v25, 4 }
 0x426   :  { %3129 = vpow2.f32 %v2830_v26  ;;  %v2831_v28 = vmul.f32 -1.442695, %v1324_v27  ;;  %v2832_v30 = vmul.f32 -1.442695, %v1335_v29 }
 0x428   :  { %3131 = vpow2.f32 %v2831_v28 }
 0x429   :  { %3133 = vpow2.f32 %v2832_v30  ;;  %v2834_v30 = vld [vmem:[%s3910_s0 + $0x20] sm:$0xff] }
 0x430   :  { %v3130_v31 = vpop.eup %3129 }
 0x431   :  { %v1320_v33 = vadd.f32 1.0, %v3130_v31 }
 0x432   :  { %v3132_v45 = vpop.eup %3131 }
 0x433   :  { %3135 = vrcp.f32 %v1320_v33  ;;  %v1329_v56 = vadd.f32 1.0, %v3132_v45  ;;  %v3134_v58 = vpop.eup %3133 }
 0x434   :  { %3137 = vtanh.f32 %v1332_v32  ;;  %v1340_v11 = vadd.f32 1.0, %v3134_v58 }
 0x435   :  { %3139 = vrcp.f32 %v1329_v56 }
 0x436   :  { %3141 = vrcp.f32 %v1340_v11 }
 0x43d   :  { %v3136_v59 = vpop.eup %3135 }
 0x43e   :  { %v3138_v60 = vpop.eup %3137 }
 0x43f   :  { %v3140_v61 = vpop.eup %3139  ;;  %v1344_v13 = vmul.f32 %v3138_v60, %v3136_v59 }
 0x440   :  { %v1343_v12 = vmul.f32 %v3140_v61, %v3554_v57  ;;  %v3142_v15 = vpop.eup %3141 }
 0x442   :  { %v3762_v14 = vadd.f32 %v1344_v13, %v1343_v12 }
 0x444   :  { %3143 = vtanh.f32 %v3762_v14 }
 0x44e   :  { %v3144_v16 = vpop.eup %3143 }
 0x44f   :  { %v1347_v17 = vmul.f32 %v3144_v16, %v3142_v15 }
 0x451   :  { %2833 = vst [vmem:[%s3911_s2 + $0x6] sm:$0x3] %v1347_v17  ;;  %v1352_v18 = vpack.c.bf16 %v1347_v17, %v1347_v17 }
 0x453   :  { %1578 = vmatmul.mubr.bf16.vlgmr.msra.gmra.mrb[16].mxu0 %v1352_v18  ;;  %1619 = vmatmul.mubr.bf16.vlgmr.msra.gmra.mrb[16].mxu1 %v1352_v18 }
 0x454   :  { %1879 = vmatpush1.bf16.msra.mxu0 %v3575_v3  ;;  %1920 = vmatpush1.bf16.msra.mxu1 %v3580_v63 }
 0x455   :  { %1880 = vmatprep.subr.bf16.mxu0 %v3594_v34  ;;  %1921 = vmatprep.subr.bf16.mxu1 %v3604_v36 }
 0x456   :  { %1910 = vmatprep.mubr.bf16.mxu0 %v3209_v1  ;;  %1951 = vmatprep.mubr.bf16.mxu1 %v3209_v1 }
 0x458   :  { %1881 = vmatpush1.bf16.msra.mxu0 %v3589_v2  ;;  %1922 = vmatpush1.bf16.msra.mxu1 %v3599_v35 }
 0x459   :  { %1882 = vmatprep.subr.bf16.mxu0 %v3609_v37  ;;  %1923 = vmatprep.subr.bf16.mxu1 %v3615_v38 }
 0x45c   :  { %1883 = vmatpush1.bf16.msra.mxu0 %v3622_v39  ;;  %1924 = vmatpush1.bf16.msra.mxu1 %v3629_v40 }
 0x45d   :  { %1884 = vmatprep.subr.bf16.mxu0 %v3634_v41  ;;  %1925 = vmatprep.subr.bf16.mxu1 %v3640_v42 }
 0x460   :  { %1885 = vmatpush1.bf16.msra.mxu0 %v3646_v44  ;;  %1926 = vmatpush1.bf16.msra.mxu1 %v3653_v46 }
 0x461   :  { %1886 = vmatprep.subr.bf16.mxu0 %v3658_v47  ;;  %1927 = vmatprep.subr.bf16.mxu1 %v3664_v48 }
 0x464   :  { %1887 = vmatpush1.bf16.msra.mxu0 %v3670_v49  ;;  %1928 = vmatpush1.bf16.msra.mxu1 %v3677_v50 }
 0x465   :  { %1888 = vmatprep.subr.bf16.mxu0 %v3682_v51  ;;  %1929 = vmatprep.subr.bf16.mxu1 %v3688_v52 }
 0x468   :  { %1889 = vmatpush1.bf16.msra.mxu0 %v3694_v53  ;;  %1930 = vmatpush1.bf16.msra.mxu1 %v3701_v54 }
 0x469   :  { %1890 = vmatprep.subr.bf16.mxu0 %v3706_v55  ;;  %1931 = vmatprep.subr.bf16.mxu1 %v3712_v4 }
 0x46c   :  { %1891 = vmatpush1.bf16.msra.mxu0 %v3718_v5  ;;  %1932 = vmatpush1.bf16.msra.mxu1 %v3725_v6 }
 0x46d   :  { %1892 = vmatprep.subr.bf16.mxu0 %v3730_v7  ;;  %1933 = vmatprep.subr.bf16.mxu1 %v3736_v8 }
 0x470   :  { %1893 = vmatpush1.bf16.msra.mxu0 %v3742_v9  ;;  %1934 = vmatpush1.bf16.msra.mxu1 %v3749_v10 }
 0x471   :  { %2211 = vmatprep.subr.bf16.mxu0 %v3565_v0  ;;  %2252 = vmatprep.subr.bf16.mxu1 %v3570_v62 }
 0x526   :  { %v1579_v57 = vpop.f32.mrb[16].mxu0  ;;  %v1620_v19 = vpop.f32.mrb[16].mxu1 }
 0x527   :  { %v1581_v20 = vpop.f32.mrb[17].mxu0  ;;  %v1622_v21 = vpop.f32.mrb[17].mxu1 }
 0x528   :  { %v1631_v22 = vcombine.low %v1579_v57, %v1581_v20  ;;  %v1632_v23 = vcombine.low %v1620_v19, %v1622_v21  ;;  %v1583_v24 = vpop.f32.mrb[18].mxu0  ;;  %v1624_v25 = vpop.f32.mrb[18].mxu1 }
 0x529   :  { %v1584_v26 = vpop.f32.mrb[19].mxu0  ;;  %v1625_v27 = vpop.f32.mrb[19].mxu1 }
 0x52a   :  { %v1639_v28 = vrot.slane %v1631_v22, %v3457_v43  ;;  %v1646_v29 = vrot.slane %v1632_v23, %v3457_v43 }
 0x52c   :  { %v1647_v31 = vcombine.low %v1639_v28, %v1646_v29 }
 0x52e   :  { %v1649_v32 = vadd.f32 %v2834_v30, %v1647_v31 }
 0x530   :  { %v2867_v33 = vmul.f32 -1.442695, %v1649_v32  ;;  %v1657_v45 = vrot.slane %v1649_v32, 2  ;;  %v1668_v58 = vrot.slane %v1649_v32, 6  ;;  %v1665_v61 = vrot.slane %v1649_v32, 4 }
 0x532   :  { %3145 = vpow2.f32 %v2867_v33  ;;  %v2868_v56 = vmul.f32 -1.442695, %v1657_v45  ;;  %v2869_v59 = vmul.f32 -1.442695, %v1668_v58 }
 0x534   :  { %3147 = vpow2.f32 %v2868_v56 }
 0x535   :  { %3149 = vpow2.f32 %v2869_v59 }
 0x53c   :  { %v3146_v60 = vpop.eup %3145 }
 0x53d   :  { %v1653_v11 = vadd.f32 1.0, %v3146_v60 }
 0x53e   :  { %v3148_v12 = vpop.eup %3147 }
 0x53f   :  { %3151 = vrcp.f32 %v1653_v11  ;;  %v1662_v13 = vadd.f32 1.0, %v3148_v12  ;;  %v3150_v15 = vpop.eup %3149 }
 0x540   :  { %3153 = vtanh.f32 %v1665_v61  ;;  %v1673_v57 = vadd.f32 1.0, %v3150_v15 }
 0x541   :  { %3155 = vrcp.f32 %v1662_v13 }
 0x542   :  { %3157 = vrcp.f32 %v1673_v57 }
 0x549   :  { %v3152_v16 = vpop.eup %3151 }
 0x54a   :  { %v3154_v17 = vpop.eup %3153 }
 0x54b   :  { %v3156_v18 = vpop.eup %3155  ;;  %v1677_v20 = vmul.f32 %v3154_v17, %v3152_v16 }
 0x54c   :  { %v1676_v19 = vmul.f32 %v3156_v18, %v3762_v14  ;;  %v3158_v22 = vpop.eup %3157 }
 0x54e   :  { %v3808_v21 = vadd.f32 %v1677_v20, %v1676_v19 }
 0x550   :  { %3159 = vtanh.f32 %v3808_v21 }
 0x55a   :  { %v3160_v23 = vpop.eup %3159 }
 0x55b   :  { %v1680_v24 = vmul.f32 %v3160_v23, %v3158_v22 }
 0x55d   :  { %2870 = vst [vmem:[%s3911_s2 + $0x8] sm:$0x3] %v1680_v24  ;;  %v1685_v25 = vpack.c.bf16 %v1680_v24, %v1680_v24 }
 0x55f   :  { %1911 = vmatmul.mubr.bf16.vlgmr.msra.gmra.mrb[20].mxu0 %v1685_v25  ;;  %1952 = vmatmul.mubr.bf16.vlgmr.msra.gmra.mrb[20].mxu1 %v1685_v25 }
 0x560   :  { %2212 = vmatpush1.bf16.msra.mxu0 %v3575_v3  ;;  %2253 = vmatpush1.bf16.msra.mxu1 %v3580_v63 }
 0x561   :  { %2213 = vmatprep.subr.bf16.mxu0 %v3594_v34  ;;  %2254 = vmatprep.subr.bf16.mxu1 %v3604_v36 }
 0x562   :  { %2243 = vmatprep.mubr.bf16.mxu0 %v3209_v1  ;;  %2284 = vmatprep.mubr.bf16.mxu1 %v3209_v1 }
 0x564   :  { %2214 = vmatpush1.bf16.msra.mxu0 %v3589_v2  ;;  %2255 = vmatpush1.bf16.msra.mxu1 %v3599_v35 }
 0x565   :  { %2215 = vmatprep.subr.bf16.mxu0 %v3609_v37  ;;  %2256 = vmatprep.subr.bf16.mxu1 %v3615_v38 }
 0x568   :  { %2216 = vmatpush1.bf16.msra.mxu0 %v3622_v39  ;;  %2257 = vmatpush1.bf16.msra.mxu1 %v3629_v40 }
 0x569   :  { %2217 = vmatprep.subr.bf16.mxu0 %v3634_v41  ;;  %2258 = vmatprep.subr.bf16.mxu1 %v3640_v42 }
 0x56c   :  { %2218 = vmatpush1.bf16.msra.mxu0 %v3646_v44  ;;  %2259 = vmatpush1.bf16.msra.mxu1 %v3653_v46 }
 0x56d   :  { %2219 = vmatprep.subr.bf16.mxu0 %v3658_v47  ;;  %2260 = vmatprep.subr.bf16.mxu1 %v3664_v48 }
 0x570   :  { %2220 = vmatpush1.bf16.msra.mxu0 %v3670_v49  ;;  %2261 = vmatpush1.bf16.msra.mxu1 %v3677_v50 }
 0x571   :  { %2221 = vmatprep.subr.bf16.mxu0 %v3682_v51  ;;  %2262 = vmatprep.subr.bf16.mxu1 %v3688_v52 }
 0x574   :  { %2222 = vmatpush1.bf16.msra.mxu0 %v3694_v53  ;;  %2263 = vmatpush1.bf16.msra.mxu1 %v3701_v54 }
 0x575   :  { %2223 = vmatprep.subr.bf16.mxu0 %v3706_v55  ;;  %2264 = vmatprep.subr.bf16.mxu1 %v3712_v4 }
 0x578   :  { %2224 = vmatpush1.bf16.msra.mxu0 %v3718_v5  ;;  %2265 = vmatpush1.bf16.msra.mxu1 %v3725_v6 }
 0x579   :  { %2225 = vmatprep.subr.bf16.mxu0 %v3730_v7  ;;  %2266 = vmatprep.subr.bf16.mxu1 %v3736_v8 }
 0x57c   :  { %2226 = vmatpush1.bf16.msra.mxu0 %v3742_v9  ;;  %2267 = vmatpush1.bf16.msra.mxu1 %v3749_v10 }
 0x57d   :  { %2544 = vmatprep.subr.bf16.mxu0 %v3565_v0  ;;  %2585 = vmatprep.subr.bf16.mxu1 %v3570_v62  ;;  %v2871_v0 = vld [vmem:[%s3910_s0 + $0x28] sm:$0xff] }
 0x632   :  { %v1912_v14 = vpop.f32.mrb[20].mxu0  ;;  %v1953_v26 = vpop.f32.mrb[20].mxu1 }
 0x633   :  { %v1914_v27 = vpop.f32.mrb[21].mxu0  ;;  %v1955_v28 = vpop.f32.mrb[21].mxu1 }
 0x634   :  { %v1964_v29 = vcombine.low %v1912_v14, %v1914_v27  ;;  %v1965_v30 = vcombine.low %v1953_v26, %v1955_v28  ;;  %v1916_v31 = vpop.f32.mrb[22].mxu0  ;;  %v1957_v32 = vpop.f32.mrb[22].mxu1 }
 0x635   :  { %v1917_v33 = vpop.f32.mrb[23].mxu0  ;;  %v1958_v45 = vpop.f32.mrb[23].mxu1 }
 0x636   :  { %v1972_v56 = vrot.slane %v1964_v29, %v3457_v43  ;;  %v1979_v58 = vrot.slane %v1965_v30, %v3457_v43 }
 0x638   :  { %v1980_v59 = vcombine.low %v1972_v56, %v1979_v58 }
 0x63a   :  { %v1982_v62 = vadd.f32 %v2871_v0, %v1980_v59 }
 0x63c   :  { %v2904_v60 = vmul.f32 -1.442695, %v1982_v62  ;;  %v1990_v61 = vrot.slane %v1982_v62, 2  ;;  %v2001_v12 = vrot.slane %v1982_v62, 6  ;;  %v1998_v16 = vrot.slane %v1982_v62, 4 }
 0x63e   :  { %3161 = vpow2.f32 %v2904_v60  ;;  %v2905_v11 = vmul.f32 -1.442695, %v1990_v61  ;;  %v2906_v13 = vmul.f32 -1.442695, %v2001_v12 }
 0x640   :  { %3163 = vpow2.f32 %v2905_v11 }
 0x641   :  { %3165 = vpow2.f32 %v2906_v13 }
 0x648   :  { %v3162_v15 = vpop.eup %3161 }
 0x649   :  { %v1986_v17 = vadd.f32 1.0, %v3162_v15 }
 0x64a   :  { %v3164_v18 = vpop.eup %3163 }
 0x64b   :  { %3167 = vrcp.f32 %v1986_v17  ;;  %v1995_v57 = vadd.f32 1.0, %v3164_v18  ;;  %v3166_v19 = vpop.eup %3165  ;;  %v2945_v18 = vld [vmem:[%s3910_s0 + $0x38] sm:$0xff] }
 0x64c   :  { %3169 = vtanh.f32 %v1998_v16  ;;  %v2006_v24 = vadd.f32 1.0, %v3166_v19 }
 0x64d   :  { %3171 = vrcp.f32 %v1995_v57 }
 0x64e   :  { %3173 = vrcp.f32 %v2006_v24 }
 0x655   :  { %v3168_v20 = vpop.eup %3167 }
 0x656   :  { %v3170_v22 = vpop.eup %3169 }
 0x657   :  { %v3172_v23 = vpop.eup %3171  ;;  %v2010_v14 = vmul.f32 %v3170_v22, %v3168_v20 }
 0x658   :  { %v2009_v25 = vmul.f32 %v3172_v23, %v3808_v21  ;;  %v3174_v27 = vpop.eup %3173 }
 0x65a   :  { %v3854_v26 = vadd.f32 %v2010_v14, %v2009_v25 }
 0x65c   :  { %3175 = vtanh.f32 %v3854_v26 }
 0x666   :  { %v3176_v28 = vpop.eup %3175 }
 0x667   :  { %v2013_v29 = vmul.f32 %v3176_v28, %v3174_v27 }
 0x669   :  { %2907 = vst [vmem:[%s3911_s2 + $0xa] sm:$0x3] %v2013_v29  ;;  %v2018_v30 = vpack.c.bf16 %v2013_v29, %v2013_v29 }
 0x66b   :  { %2244 = vmatmul.mubr.bf16.vlgmr.msra.gmra.mrb[24].mxu0 %v2018_v30  ;;  %2285 = vmatmul.mubr.bf16.vlgmr.msra.gmra.mrb[24].mxu1 %v2018_v30 }
 0x66c   :  { %2545 = vmatpush1.bf16.msra.mxu0 %v3575_v3  ;;  %2586 = vmatpush1.bf16.msra.mxu1 %v3580_v63 }
 0x66d   :  { %2546 = vmatprep.subr.bf16.mxu0 %v3594_v34  ;;  %2587 = vmatprep.subr.bf16.mxu1 %v3604_v36 }
 0x66e   :  { %2576 = vmatprep.mubr.bf16.mxu0 %v3209_v1  ;;  %2617 = vmatprep.mubr.bf16.mxu1 %v3209_v1 }
 0x670   :  { %2547 = vmatpush1.bf16.msra.mxu0 %v3589_v2  ;;  %2588 = vmatpush1.bf16.msra.mxu1 %v3599_v35 }
 0x671   :  { %2548 = vmatprep.subr.bf16.mxu0 %v3609_v37  ;;  %2589 = vmatprep.subr.bf16.mxu1 %v3615_v38 }
 0x674   :  { %2549 = vmatpush1.bf16.msra.mxu0 %v3622_v39  ;;  %2590 = vmatpush1.bf16.msra.mxu1 %v3629_v40 }
 0x675   :  { %2550 = vmatprep.subr.bf16.mxu0 %v3634_v41  ;;  %2591 = vmatprep.subr.bf16.mxu1 %v3640_v42  ;;  %v2908_v42 = vld [vmem:[%s3910_s0 + $0x30] sm:$0xff] }
 0x678   :  { %2551 = vmatpush1.bf16.msra.mxu0 %v3646_v44  ;;  %2592 = vmatpush1.bf16.msra.mxu1 %v3653_v46 }
 0x679   :  { %2552 = vmatprep.subr.bf16.mxu0 %v3658_v47  ;;  %2593 = vmatprep.subr.bf16.mxu1 %v3664_v48 }
 0x67c   :  { %2553 = vmatpush1.bf16.msra.mxu0 %v3670_v49  ;;  %2594 = vmatpush1.bf16.msra.mxu1 %v3677_v50 }
 0x67d   :  { %2554 = vmatprep.subr.bf16.mxu0 %v3682_v51  ;;  %2595 = vmatprep.subr.bf16.mxu1 %v3688_v52 }
 0x680   :  { %2555 = vmatpush1.bf16.msra.mxu0 %v3694_v53  ;;  %2596 = vmatpush1.bf16.msra.mxu1 %v3701_v54 }
 0x681   :  { %2556 = vmatprep.subr.bf16.mxu0 %v3706_v55  ;;  %2597 = vmatprep.subr.bf16.mxu1 %v3712_v4 }
 0x684   :  { %2557 = vmatpush1.bf16.msra.mxu0 %v3718_v5  ;;  %2598 = vmatpush1.bf16.msra.mxu1 %v3725_v6 }
 0x685   :  { %2558 = vmatprep.subr.bf16.mxu0 %v3730_v7  ;;  %2599 = vmatprep.subr.bf16.mxu1 %v3736_v8 }
 0x688   :  { %2559 = vmatpush1.bf16.msra.mxu0 %v3742_v9  ;;  %2600 = vmatpush1.bf16.msra.mxu1 %v3749_v10 }
 0x73e   :  { %v2245_v1 = vpop.f32.mrb[24].mxu0  ;;  %v2286_v3 = vpop.f32.mrb[24].mxu1 }
 0x73f   :  { %v2247_v63 = vpop.f32.mrb[25].mxu0  ;;  %v2288_v2 = vpop.f32.mrb[25].mxu1 }
 0x740   :  { %v2297_v34 = vcombine.low %v2245_v1, %v2247_v63  ;;  %v2298_v35 = vcombine.low %v2286_v3, %v2288_v2  ;;  %v2249_v36 = vpop.f32.mrb[26].mxu0  ;;  %v2290_v37 = vpop.f32.mrb[26].mxu1 }
 0x741   :  { %v2250_v38 = vpop.f32.mrb[27].mxu0  ;;  %v2291_v39 = vpop.f32.mrb[27].mxu1 }
 0x742   :  { %v2305_v40 = vrot.slane %v2297_v34, %v3457_v43  ;;  %v2312_v41 = vrot.slane %v2298_v35, %v3457_v43 }
 0x744   :  { %v2313_v44 = vcombine.low %v2305_v40, %v2312_v41 }
 0x746   :  { %v2315_v46 = vadd.f32 %v2908_v42, %v2313_v44 }
 0x748   :  { %v2941_v47 = vmul.f32 -1.442695, %v2315_v46  ;;  %v2323_v48 = vrot.slane %v2315_v46, 2  ;;  %v2334_v50 = vrot.slane %v2315_v46, 6  ;;  %v2331_v53 = vrot.slane %v2315_v46, 4 }
 0x74a   :  { %3177 = vpow2.f32 %v2941_v47  ;;  %v2942_v49 = vmul.f32 -1.442695, %v2323_v48  ;;  %v2943_v51 = vmul.f32 -1.442695, %v2334_v50 }
 0x74c   :  { %3179 = vpow2.f32 %v2942_v49 }
 0x74d   :  { %3181 = vpow2.f32 %v2943_v51 }
 0x754   :  { %v3178_v52 = vpop.eup %3177 }
 0x755   :  { %v2319_v54 = vadd.f32 1.0, %v3178_v52 }
 0x756   :  { %v3180_v55 = vpop.eup %3179 }
 0x757   :  { %3183 = vrcp.f32 %v2319_v54  ;;  %v2328_v4 = vadd.f32 1.0, %v3180_v55  ;;  %v3182_v5 = vpop.eup %3181 }
 0x758   :  { %3185 = vtanh.f32 %v2331_v53  ;;  %v2339_v9 = vadd.f32 1.0, %v3182_v5 }
 0x759   :  { %3187 = vrcp.f32 %v2328_v4 }
 0x75a   :  { %3189 = vrcp.f32 %v2339_v9 }
 0x761   :  { %v3184_v6 = vpop.eup %3183 }
 0x762   :  { %v3186_v7 = vpop.eup %3185 }
 0x763   :  { %v3188_v8 = vpop.eup %3187  ;;  %v2343_v21 = vmul.f32 %v3186_v7, %v3184_v6 }
 0x764   :  { %v2342_v10 = vmul.f32 %v3188_v8, %v3854_v26  ;;  %v3190_v32 = vpop.eup %3189 }
 0x766   :  { %v2344_v31 = vadd.f32 %v2343_v21, %v2342_v10 }
 0x768   :  { %3191 = vtanh.f32 %v2344_v31 }
 0x772   :  { %v3192_v33 = vpop.eup %3191 }
 0x773   :  { %v2346_v45 = vmul.f32 %v3192_v33, %v3190_v32 }
 0x775   :  { %2944 = vst [vmem:[%s3911_s2 + $0xc] sm:$0x3] %v2346_v45  ;;  %v2351_v56 = vpack.c.bf16 %v2346_v45, %v2346_v45 }
 0x777   :  { %2577 = vmatmul.mubr.bf16.vlgmr.msra.gmra.mrb[28].mxu0 %v2351_v56  ;;  %2618 = vmatmul.mubr.bf16.vlgmr.msra.gmra.mrb[28].mxu1 %v2351_v56 }
 0x84a   :  { %v2578_v58 = vpop.f32.mrb[28].mxu0  ;;  %v2619_v0 = vpop.f32.mrb[28].mxu1 }
 0x84b   :  { %v2580_v59 = vpop.f32.mrb[29].mxu0  ;;  %v2621_v62 = vpop.f32.mrb[29].mxu1 }
 0x84c   :  { %v2630_v60 = vcombine.low %v2578_v58, %v2580_v59  ;;  %v2631_v61 = vcombine.low %v2619_v0, %v2621_v62  ;;  %v2582_v11 = vpop.f32.mrb[30].mxu0  ;;  %v2623_v12 = vpop.f32.mrb[30].mxu1 }
 0x84d   :  { %v2583_v13 = vpop.f32.mrb[31].mxu0  ;;  %v2624_v15 = vpop.f32.mrb[31].mxu1 }
 0x84e   :  { %v2638_v16 = vrot.slane %v2630_v60, %v3457_v43  ;;  %v2645_v17 = vrot.slane %v2631_v61, %v3457_v43 }
 0x850   :  { %v2646_v57 = vcombine.low %v2638_v16, %v2645_v17 }
 0x852   :  { %v2648_v19 = vadd.f32 %v2945_v18, %v2646_v57 }
 0x854   :  { %v2978_v20 = vmul.f32 -1.442695, %v2648_v19  ;;  %v2656_v22 = vrot.slane %v2648_v19, 2  ;;  %v2667_v24 = vrot.slane %v2648_v19, 6  ;;  %v2664_v26 = vrot.slane %v2648_v19, 4 }
 0x856   :  { %3193 = vpow2.f32 %v2978_v20  ;;  %v2979_v23 = vmul.f32 -1.442695, %v2656_v22  ;;  %v2980_v25 = vmul.f32 -1.442695, %v2667_v24 }
 0x858   :  { %3195 = vpow2.f32 %v2979_v23 }
 0x859   :  { %3197 = vpow2.f32 %v2980_v25 }
 0x860   :  { %v3194_v14 = vpop.eup %3193 }
 0x861   :  { %v2652_v27 = vadd.f32 1.0, %v3194_v14 }
 0x862   :  { %v3196_v28 = vpop.eup %3195 }
 0x863   :  { %3199 = vrcp.f32 %v2652_v27  ;;  %v2661_v43 = vadd.f32 1.0, %v3196_v28  ;;  %v3198_v29 = vpop.eup %3197 }
 0x864   :  { %3201 = vtanh.f32 %v2664_v26  ;;  %v2672_v63 = vadd.f32 1.0, %v3198_v29 }
 0x865   :  { %3203 = vrcp.f32 %v2661_v43 }
 0x866   :  { %3205 = vrcp.f32 %v2672_v63 }
 0x86d   :  { %v3200_v30 = vpop.eup %3199 }
 0x86e   :  { %v3202_v1 = vpop.eup %3201 }
 0x86f   :  { %v3204_v3 = vpop.eup %3203  ;;  %v2676_v34 = vmul.f32 %v3202_v1, %v3200_v30 }
 0x870   :  { %v2675_v2 = vmul.f32 %v3204_v3, %v2344_v31  ;;  %v3206_v36 = vpop.eup %3205 }
 0x872   :  { %v2677_v35 = vadd.f32 %v2676_v34, %v2675_v2 }
 0x874   :  { %3207 = vtanh.f32 %v2677_v35  ;;  %2683 = vst [vmem:[#allocation3] sm:$0x3] %v2677_v35 }
 0x87e   :  { %v3208_v37 = vpop.eup %3207 }
 0x87f   :  { %v2679_v38 = vmul.f32 %v3208_v37, %v3206_v36 }
 0x881   :  { %2981 = vst [vmem:[%s3911_s2 + $0xe] sm:$0x3] %v2679_v38  ;;  %2682 = vst [vmem:[#allocation2] sm:$0x3] %v2679_v38 }

</bundles_post_ra>
